<compile_context>
chip_gen: v7x
topology: tpu7x:2x2x1
jax: 0.10.0
libtpu: 0.0.40
codegen_flags: <defaults>
</compile_context>

<pallas_src>
import itertools
import math

import numpy as np
import jax
import jax.numpy as jnp
from jax.experimental import pallas as pl
from jax.experimental.pallas import tpu as pltpu


# ----------------------------------------------------------------------------
# Constants (deterministic, mirrors DiffJPEG utils.py / compression.py)
# ----------------------------------------------------------------------------
def quality_to_factor(quality):
    if quality < 50:
        quality = 5000.0 / quality
    else:
        quality = 200.0 - quality * 2
    return quality / 100.0


# note the .T, exactly as in the reference utils.py
_Y_TABLE = np.array(
    [[16, 11, 10, 16, 24, 40, 51, 61],
     [12, 12, 14, 19, 26, 58, 60, 55],
     [14, 13, 16, 24, 40, 57, 69, 56],
     [14, 17, 22, 29, 51, 87, 80, 62],
     [18, 22, 37, 56, 68, 109, 103, 77],
     [24, 35, 55, 64, 81, 104, 113, 92],
     [49, 64, 78, 87, 103, 121, 120, 101],
     [72, 92, 95, 98, 112, 100, 103, 99]], dtype=np.float32).T

_C_TABLE = np.empty((8, 8), dtype=np.float32)
_C_TABLE.fill(99)
_C_TABLE[:4, :4] = np.array(
    [[17, 18, 24, 47], [18, 21, 26, 66],
     [24, 26, 56, 99], [47, 66, 99, 99]], dtype=np.float32).T


def _build_dct_constants():
    t_dct = np.zeros((8, 8, 8, 8), dtype=np.float32)
    t_idct = np.zeros((8, 8, 8, 8), dtype=np.float32)
    for x, y, u, v in itertools.product(range(8), repeat=4):
        t_dct[x, y, u, v] = math.cos((2 * x + 1) * u * math.pi / 16) * \
                            math.cos((2 * y + 1) * v * math.pi / 16)
        t_idct[x, y, u, v] = math.cos((2 * u + 1) * x * math.pi / 16) * \
                             math.cos((2 * v + 1) * y * math.pi / 16)
    alpha = np.array([1.0 / math.sqrt(2.0)] + [1.0] * 7, dtype=np.float32)
    scale = (np.outer(alpha, alpha) * 0.25).astype(np.float32)
    alpha2 = np.outer(alpha, alpha).astype(np.float32)
    return (t_dct.reshape(64, 64), t_idct.reshape(64, 64),
            scale.reshape(1, 64), alpha2.reshape(1, 64))


_T_DCT, _T_IDCT, _SCALE_FLAT, _ALPHA_FLAT = _build_dct_constants()

_MAX_L_TILE = 2048                        # packed-block rows per grid step (~1 MiB/buffer f32)
_VMEM_LIMIT = 32 * 1024 * 1024            # explicit scoped-VMEM limit (safe on v5e/v6e/v7x)
_COLOR_VMEM_BUDGET = 12 * 1024 * 1024     # target double-buffered live bytes per color call


def _block_mats(qtable, factor, pack):
    """Fold scale/alpha/0.25/+-128 and the quant table into the DCT/IDCT mats.

    Forward  : q   = blk @ TD + bias          (== ((blk-128) @ T_DCT * scale) / qf)
    Inverse  : rec = q'  @ TI + 128           (== 0.25 * (q'*qf*alpha) @ T_IDCT + 128)
    `pack` consecutive 8x8 blocks are packed per row via block-diagonal mats.
    """
    qf = qtable.astype(np.float32).reshape(64) * np.float32(factor)
    td = _T_DCT * _SCALE_FLAT                      # scale applies to output columns
    bias = -128.0 * td.sum(axis=0)                 # the "-128" input shift
    td_q = td / qf[None, :]
    bias_q = bias / qf
    ti = (_ALPHA_FLAT.reshape(64, 1) * 0.25) * _T_IDCT
    ti_q = qf[:, None] * ti                        # dequantize folded into rows
    eye = np.eye(pack, dtype=np.float32)
    td_p = np.kron(eye, td_q).astype(np.float32)           # (64p, 64p)
    ti_p = np.kron(eye, ti_q).astype(np.float32)           # (64p, 64p)
    bias_p = np.tile(bias_q, pack).reshape(1, 64 * pack).astype(np.float32)
    return jnp.asarray(td_p), jnp.asarray(ti_p), jnp.asarray(bias_p)


# ----------------------------------------------------------------------------
# Pallas kernels
# ----------------------------------------------------------------------------
def _rgb2ycbcr_kernel(x_ref, y_ref, c_ref):
    # x_ref: (3, TH, W) in [0,1]; outputs in [0,255] YCbCr space.
    r = x_ref[0] * 255.0
    g = x_ref[1] * 255.0
    b = x_ref[2] * 255.0
    y_ref[...] = 0.299 * r + 0.587 * g + 0.114 * b
    c_ref[0] = -0.168736 * r - 0.331264 * g + 0.5 * b + 128.0
    c_ref[1] = 0.5 * r - 0.418688 * g - 0.081312 * b + 128.0


def _jpeg_block_kernel(blk_ref, td_ref, ti_ref, bias_ref, out_ref):
    # blk_ref: (TL, PW) packed flattened 8x8 blocks; td/ti: (PW, PW); bias: (1, PW).
    q = jnp.dot(blk_ref[...], td_ref[...],
                preferred_element_type=jnp.float32) + bias_ref[...]
    # differentiable rounding: round(x) + (x - round(x))^3
    rq = jnp.round(q)
    d = q - rq
    out_ref[...] = jnp.dot(rq + d * d * d, ti_ref[...],
                           preferred_element_type=jnp.float32) + 128.0


def _ycbcr2rgb_kernel(y_ref, c_ref, o_ref):
    y = y_ref[...]
    cb = c_ref[0] - 128.0
    cr = c_ref[1] - 128.0
    r = y + 1.402 * cr
    g = y - 0.344136 * cb - 0.714136 * cr
    b = y + 1.772 * cb
    # clamp to [0, 255] then rescale to [0, 1] (as decompress_jpeg.forward)
    o_ref[0] = jnp.clip(r, 0.0, 255.0) / 255.0
    o_ref[1] = jnp.clip(g, 0.0, 255.0) / 255.0
    o_ref[2] = jnp.clip(b, 0.0, 255.0) / 255.0


# ----------------------------------------------------------------------------
# pallas_call wrappers
# ----------------------------------------------------------------------------
def _row_tile(H, W, n_planes):
    # Largest multiple-of-8 row tile whose double-buffered f32 working set
    # (n_planes planes of (th, W)) stays within the color VMEM budget.
    th = _COLOR_VMEM_BUDGET // (2 * n_planes * W * 4)
    th = (th // 8) * 8
    return max(8, min(H, th))


def _color_fwd(x):
    """(N,3,H,W) in [0,1] -> y:(N,H,W), c:(2,N,H,W) (Cb, Cr) in [0,255]."""
    N, _, H, W = x.shape
    th = _row_tile(H, W, 6)
    grid = (N, pl.cdiv(H, th))
    return pl.pallas_call(
        _rgb2ycbcr_kernel,
        grid=grid,
        in_specs=[pl.BlockSpec((None, 3, th, W), lambda n, h: (n, 0, h, 0))],
        out_specs=[pl.BlockSpec((None, th, W), lambda n, h: (n, h, 0)),
                   pl.BlockSpec((2, None, th, W), lambda n, h: (0, n, h, 0))],
        out_shape=[jax.ShapeDtypeStruct((N, H, W), jnp.float32),
                   jax.ShapeDtypeStruct((2, N, H, W), jnp.float32)],
        compiler_params=pltpu.CompilerParams(
            dimension_semantics=("parallel", "parallel"),
            vmem_limit_bytes=_VMEM_LIMIT),
    )(x)


def _color_bwd(y, c):
    """y:(N,H,W), c:(2,N,H,W) -> (N,3,H,W) in [0,1]."""
    N, H, W = y.shape
    th = _row_tile(H, W, 6)
    grid = (N, pl.cdiv(H, th))
    return pl.pallas_call(
        _ycbcr2rgb_kernel,
        grid=grid,
        in_specs=[pl.BlockSpec((None, th, W), lambda n, h: (n, h, 0)),
                  pl.BlockSpec((2, None, th, W), lambda n, h: (0, n, h, 0))],
        out_specs=pl.BlockSpec((None, 3, th, W), lambda n, h: (n, 0, h, 0)),
        out_shape=jax.ShapeDtypeStruct((N, 3, H, W), jnp.float32),
        compiler_params=pltpu.CompilerParams(
            dimension_semantics=("parallel", "parallel"),
            vmem_limit_bytes=_VMEM_LIMIT),
    )(y, c)


def _jpeg_blocks(blocks, td, ti, bias):
    """blocks: (NB, Lp, PW) packed flattened blocks -> reconstructed blocks."""
    NB, Lp, PW = blocks.shape
    tl = Lp if Lp <= _MAX_L_TILE else _MAX_L_TILE
    grid = (NB, pl.cdiv(Lp, tl))
    return pl.pallas_call(
        _jpeg_block_kernel,
        grid=grid,
        in_specs=[pl.BlockSpec((None, tl, PW), lambda n, l: (n, l, 0)),
                  pl.BlockSpec((PW, PW), lambda n, l: (0, 0)),
                  pl.BlockSpec((PW, PW), lambda n, l: (0, 0)),
                  pl.BlockSpec((1, PW), lambda n, l: (0, 0))],
        out_specs=pl.BlockSpec((None, tl, PW), lambda n, l: (n, l, 0)),
        out_shape=jax.ShapeDtypeStruct((NB, Lp, PW), jnp.float32),
        compiler_params=pltpu.CompilerParams(
            dimension_semantics=("parallel", "parallel"),
            vmem_limit_bytes=_VMEM_LIMIT),
    )(blocks, td, ti, bias)


# ----------------------------------------------------------------------------
# Plain-JAX glue (layout only)
# ----------------------------------------------------------------------------
def _block_split(img, pack):
    # (N, H, W) -> (N, L/pack, 64*pack), matching block_splitting (+ row packing)
    N, H, W = img.shape
    L = (H // 8) * (W // 8)
    blk = img.reshape(N, H // 8, 8, W // 8, 8).transpose(0, 1, 3, 2, 4)
    return blk.reshape(N, L // pack, 64 * pack)


def _block_merge(blocks, H, W):
    # inverse of _block_split, matching block_merging
    N = blocks.shape[0]
    blk = blocks.reshape(N, H // 8, W // 8, 8, 8).transpose(0, 1, 3, 2, 4)
    return blk.reshape(N, H, W)


def _avgpool2(x):
    # AvgPool2d(kernel=2, stride=2), no padding
    N, H, W = x.shape
    return x.reshape(N, H // 2, 2, W // 2, 2).mean(axis=(2, 4))


def _upsample2(x):
    # nearest-neighbor 2x upsampling, matching chroma_upsampling.repeat
    return jnp.repeat(jnp.repeat(x, 2, axis=1), 2, axis=2)


def _jpeg_component(plane, qtable, factor):
    # (NB, Hc, Wc) plane -> DCT/quant/diff_round/dequant/IDCT reconstruction.
    NB, Hc, Wc = plane.shape
    L = (Hc // 8) * (Wc // 8)
    pack = 2 if L % 2 == 0 else 1          # lane-dense 128-wide rows when possible
    td, ti, bias = _block_mats(qtable, factor, pack)
    blocks = _block_split(plane, pack)
    rec = _jpeg_blocks(blocks, td, ti, bias)
    return _block_merge(rec, Hc, Wc)


# ----------------------------------------------------------------------------
# DiffJPEG forward
# ----------------------------------------------------------------------------
def _diff_jpeg_impl(x, *, quality):
    N, C, H, W = x.shape
    assert C == 3 and H % 16 == 0 and W % 16 == 0
    factor = quality_to_factor(quality)

    x = x.astype(jnp.float32)

    # ---- compress ----
    y, c = _color_fwd(x)                       # Pallas: *255 + RGB -> YCbCr (Cb/Cr stacked)
    c = _avgpool2(c.reshape(2 * N, H, W))      # 4:2:0 chroma subsampling

    # Pallas: per-component DCT -> quantize -> diff_round -> dequant -> IDCT
    y_rec = _jpeg_component(y, _Y_TABLE, factor)    # (N, H, W)
    c_rec = _jpeg_component(c, _C_TABLE, factor)    # (2N, H/2, W/2) — Cb+Cr in one call

    # ---- decompress ----
    # TODO(synk): fold block_merge + 2x chroma upsample into the YCbCr->RGB kernel
    # (in-kernel reblocking) to remove the remaining layout round trips.
    c_up = _upsample2(c_rec).reshape(2, N, H, W)
    return _color_bwd(y_rec, c_up)             # Pallas: YCbCr -> RGB, clamp, /255, NCHW out


_diff_jpeg_jit = jax.jit(_diff_jpeg_impl, static_argnames=("quality",))


def diff_jpeg(x, quality=90):
    """x: (N, 3, H, W) float32 in [0, 1]; returns same shape/dtype."""
    return _diff_jpeg_jit(x, quality=int(quality))


if __name__ == "__main__":
    key = jax.random.PRNGKey(0)
    x = jax.random.uniform(key, (2, 3, 32, 32), dtype=jnp.float32)
    out = diff_jpeg(x, quality=90)
    out = jax.block_until_ready(out)
    assert out.shape == (2, 3, 32, 32), out.shape
    assert bool(jnp.all(jnp.isfinite(out)))
    assert bool(jnp.all((out >= 0.0) & (out <= 1.0)))
    print("KERNEL_OK")
</pallas_src>

<mosaic_0001>
module attributes {stable_mosaic.version = 11 : i64} {
  func.func @_rgb2ycbcr_kernel(%arg0: i32, %arg1: i32, %arg2: memref<1x3x32x32xf32, #tpu.memory_space<vmem>>, %arg3: memref<1x32x32xf32, #tpu.memory_space<vmem>>, %arg4: memref<2x1x32x32xf32, #tpu.memory_space<vmem>>) attributes {dimension_semantics = [#tpu.dimension_semantics<parallel>, #tpu.dimension_semantics<parallel>], iteration_bounds = array<i64: 2, 1>, scalar_prefetch = 0 : i64, scratch_operands = 0 : i64, tpu.core_type = #tpu.core_type<tc>, window_params = [{transform_indices = @transform_0, window_bounds = array<i64: 1, 3, 32, 32>}, {transform_indices = @transform_1, window_bounds = array<i64: 1, 32, 32>}, {transform_indices = @transform_2, window_bounds = array<i64: 2, 1, 32, 32>}]} {
    %c0 = arith.constant 0 : index
    %c0_0 = arith.constant 0 : index
    %c0_1 = arith.constant 0 : index
    %c0_2 = arith.constant 0 : index
    %0 = vector.load %arg2[%c0, %c0_0, %c0_1, %c0_2] : memref<1x3x32x32xf32, #tpu.memory_space<vmem>>, vector<1x1x32x32xf32>
    %1 = vector.shape_cast %0 : vector<1x1x32x32xf32> to vector<32x32xf32>
    %cst = arith.constant 2.550000e+02 : f32
    %2 = vector.broadcast %cst : f32 to vector<32x32xf32>
    %3 = arith.mulf %1, %2 : vector<32x32xf32>
    %c0_3 = arith.constant 0 : index
    %c1 = arith.constant 1 : index
    %c0_4 = arith.constant 0 : index
    %c0_5 = arith.constant 0 : index
    %4 = vector.load %arg2[%c0_3, %c1, %c0_4, %c0_5] : memref<1x3x32x32xf32, #tpu.memory_space<vmem>>, vector<1x1x32x32xf32>
    %5 = vector.shape_cast %4 : vector<1x1x32x32xf32> to vector<32x32xf32>
    %cst_6 = arith.constant 2.550000e+02 : f32
    %6 = vector.broadcast %cst_6 : f32 to vector<32x32xf32>
    %7 = arith.mulf %5, %6 : vector<32x32xf32>
    %c0_7 = arith.constant 0 : index
    %c2 = arith.constant 2 : index
    %c0_8 = arith.constant 0 : index
    %c0_9 = arith.constant 0 : index
    %8 = vector.load %arg2[%c0_7, %c2, %c0_8, %c0_9] : memref<1x3x32x32xf32, #tpu.memory_space<vmem>>, vector<1x1x32x32xf32>
    %9 = vector.shape_cast %8 : vector<1x1x32x32xf32> to vector<32x32xf32>
    %cst_10 = arith.constant 2.550000e+02 : f32
    %10 = vector.broadcast %cst_10 : f32 to vector<32x32xf32>
    %11 = arith.mulf %9, %10 : vector<32x32xf32>
    %cst_11 = arith.constant 2.990000e-01 : f32
    %12 = vector.broadcast %cst_11 : f32 to vector<32x32xf32>
    %13 = arith.mulf %12, %3 : vector<32x32xf32>
    %cst_12 = arith.constant 5.870000e-01 : f32
    %14 = vector.broadcast %cst_12 : f32 to vector<32x32xf32>
    %15 = arith.mulf %14, %7 : vector<32x32xf32>
    %16 = arith.addf %13, %15 : vector<32x32xf32>
    %cst_13 = arith.constant 1.140000e-01 : f32
    %17 = vector.broadcast %cst_13 : f32 to vector<32x32xf32>
    %18 = arith.mulf %17, %11 : vector<32x32xf32>
    %19 = arith.addf %16, %18 : vector<32x32xf32>
    %c0_14 = arith.constant 0 : index
    %c0_15 = arith.constant 0 : index
    %c0_16 = arith.constant 0 : index
    %20 = vector.load %arg3[%c0_14, %c0_15, %c0_16] : memref<1x32x32xf32, #tpu.memory_space<vmem>>, vector<1x32x32xf32>
    %21 = vector.shape_cast %20 : vector<1x32x32xf32> to vector<32x32xf32>
    %22 = vector.shape_cast %19 : vector<32x32xf32> to vector<1x32x32xf32>
    tpu.vector_store %arg3[%c0_14, %c0_15, %c0_16], %22 {strides = array<i32>} : memref<1x32x32xf32, #tpu.memory_space<vmem>>, vector<1x32x32xf32>,
    %cst_17 = arith.constant -1.687360e-01 : f32
    %23 = vector.broadcast %cst_17 : f32 to vector<32x32xf32>
    %24 = arith.mulf %23, %3 : vector<32x32xf32>
    %cst_18 = arith.constant 3.312640e-01 : f32
    %25 = vector.broadcast %cst_18 : f32 to vector<32x32xf32>
    %26 = arith.mulf %25, %7 : vector<32x32xf32>
    %27 = arith.subf %24, %26 : vector<32x32xf32>
    %cst_19 = arith.constant 5.000000e-01 : f32
    %28 = vector.broadcast %cst_19 : f32 to vector<32x32xf32>
    %29 = arith.mulf %28, %11 : vector<32x32xf32>
    %30 = arith.addf %27, %29 : vector<32x32xf32>
    %cst_20 = arith.constant 1.280000e+02 : f32
    %31 = vector.broadcast %cst_20 : f32 to vector<32x32xf32>
    %32 = arith.addf %30, %31 : vector<32x32xf32>
    %c0_21 = arith.constant 0 : index
    %c0_22 = arith.constant 0 : index
    %c0_23 = arith.constant 0 : index
    %c0_24 = arith.constant 0 : index
    %33 = vector.load %arg4[%c0_21, %c0_22, %c0_23, %c0_24] : memref<2x1x32x32xf32, #tpu.memory_space<vmem>>, vector<1x1x32x32xf32>
    %34 = vector.shape_cast %33 : vector<1x1x32x32xf32> to vector<32x32xf32>
    %35 = vector.shape_cast %32 : vector<32x32xf32> to vector<1x1x32x32xf32>
    tpu.vector_store %arg4[%c0_21, %c0_22, %c0_23, %c0_24], %35 {strides = array<i32>} : memref<2x1x32x32xf32, #tpu.memory_space<vmem>>, vector<1x1x32x32xf32>,
    %cst_25 = arith.constant 5.000000e-01 : f32
    %36 = vector.broadcast %cst_25 : f32 to vector<32x32xf32>
    %37 = arith.mulf %36, %3 : vector<32x32xf32>
    %cst_26 = arith.constant 4.186880e-01 : f32
    %38 = vector.broadcast %cst_26 : f32 to vector<32x32xf32>
    %39 = arith.mulf %38, %7 : vector<32x32xf32>
    %40 = arith.subf %37, %39 : vector<32x32xf32>
    %cst_27 = arith.constant 8.131200e-02 : f32
    %41 = vector.broadcast %cst_27 : f32 to vector<32x32xf32>
    %42 = arith.mulf %41, %11 : vector<32x32xf32>
    %43 = arith.subf %40, %42 : vector<32x32xf32>
    %cst_28 = arith.constant 1.280000e+02 : f32
    %44 = vector.broadcast %cst_28 : f32 to vector<32x32xf32>
    %45 = arith.addf %43, %44 : vector<32x32xf32>
    %c1_29 = arith.constant 1 : index
    %c0_30 = arith.constant 0 : index
    %c0_31 = arith.constant 0 : index
    %c0_32 = arith.constant 0 : index
    %46 = vector.load %arg4[%c1_29, %c0_30, %c0_31, %c0_32] : memref<2x1x32x32xf32, #tpu.memory_space<vmem>>, vector<1x1x32x32xf32>
    %47 = vector.shape_cast %46 : vector<1x1x32x32xf32> to vector<32x32xf32>
    %48 = vector.shape_cast %45 : vector<32x32xf32> to vector<1x1x32x32xf32>
    tpu.vector_store %arg4[%c1_29, %c0_30, %c0_31, %c0_32], %48 {strides = array<i32>} : memref<2x1x32x32xf32, #tpu.memory_space<vmem>>, vector<1x1x32x32xf32>,
    return
  }
  func.func @transform_0(%arg0: i32, %arg1: i32) -> (i32, i32, i32, i32) {
    %c0_i32 = arith.constant 0 : i32
    %c0_i32_0 = arith.constant 0 : i32
    %c0_i32_1 = arith.constant 0 : i32
    return %arg0, %c0_i32, %arg1, %c0_i32_0 : i32, i32, i32, i32
  }
  func.func @transform_1(%arg0: i32, %arg1: i32) -> (i32, i32, i32) {
    %c0_i32 = arith.constant 0 : i32
    %c0_i32_0 = arith.constant 0 : i32
    return %arg0, %arg1, %c0_i32 : i32, i32, i32
  }
  func.func @transform_2(%arg0: i32, %arg1: i32) -> (i32, i32, i32, i32) {
    %c0_i32 = arith.constant 0 : i32
    %c0_i32_0 = arith.constant 0 : i32
    %c0_i32_1 = arith.constant 0 : i32
    return %c0_i32, %arg0, %arg1, %c0_i32_0 : i32, i32, i32, i32
  }
}

module attributes {stable_mosaic.version = 11 : i64} {
  func.func @_jpeg_block_kernel(%arg0: i32, %arg1: i32, %arg2: memref<1x8x128xf32, #tpu.memory_space<vmem>>, %arg3: memref<128x128xf32, #tpu.memory_space<vmem>>, %arg4: memref<128x128xf32, #tpu.memory_space<vmem>>, %arg5: memref<1x128xf32, #tpu.memory_space<vmem>>, %arg6: memref<1x8x128xf32, #tpu.memory_space<vmem>>) attributes {dimension_semantics = [#tpu.dimension_semantics<parallel>, #tpu.dimension_semantics<parallel>], iteration_bounds = array<i64: 2, 1>, scalar_prefetch = 0 : i64, scratch_operands = 0 : i64, tpu.core_type = #tpu.core_type<tc>, window_params = [{transform_indices = @transform_0, window_bounds = array<i64: 1, 8, 128>}, {pipeline_mode = #tpu.pipeline_mode<synchronous>, transform_indices = @transform_1, window_bounds = array<i64: 128, 128>}, {pipeline_mode = #tpu.pipeline_mode<synchronous>, transform_indices = @transform_2, window_bounds = array<i64: 128, 128>}, {pipeline_mode = #tpu.pipeline_mode<synchronous>, transform_indices = @transform_3, window_bounds = array<i64: 1, 128>}, {transform_indices = @transform_4, window_bounds = array<i64: 1, 8, 128>}]} {
    %c0 = arith.constant 0 : index
    %c0_0 = arith.constant 0 : index
    %c0_1 = arith.constant 0 : index
    %0 = vector.load %arg2[%c0, %c0_0, %c0_1] : memref<1x8x128xf32, #tpu.memory_space<vmem>>, vector<1x8x128xf32>
    %1 = vector.shape_cast %0 : vector<1x8x128xf32> to vector<8x128xf32>
    %c0_2 = arith.constant 0 : index
    %c0_3 = arith.constant 0 : index
    %2 = vector.load %arg3[%c0_2, %c0_3] : memref<128x128xf32, #tpu.memory_space<vmem>>, vector<128x128xf32>
    %cst = arith.constant dense<0.000000e+00> : vector<8x128xf32>
    %3 = tpu.matmul %1, %2, %cst {dimension_numbers = #tpu.dot_dimension_numbers<[1], [0], [0], [1], [0, 0, 1, 1], [], []>} : vector<8x128xf32>, vector<128x128xf32>, vector<8x128xf32> -> vector<8x128xf32>
    %c0_4 = arith.constant 0 : index
    %c0_5 = arith.constant 0 : index
    %4 = vector.load %arg5[%c0_4, %c0_5] : memref<1x128xf32, #tpu.memory_space<vmem>>, vector<1x128xf32>
    %5 = vector.broadcast %4 : vector<1x128xf32> to vector<8x128xf32>
    %6 = arith.addf %3, %5 : vector<8x128xf32>
    %7 = math.roundeven %6 : vector<8x128xf32>
    %8 = arith.subf %6, %7 : vector<8x128xf32>
    %9 = arith.mulf %8, %8 : vector<8x128xf32>
    %10 = arith.mulf %9, %8 : vector<8x128xf32>
    %11 = arith.addf %7, %10 : vector<8x128xf32>
    %c0_6 = arith.constant 0 : index
    %c0_7 = arith.constant 0 : index
    %12 = vector.load %arg4[%c0_6, %c0_7] : memref<128x128xf32, #tpu.memory_space<vmem>>, vector<128x128xf32>
    %cst_8 = arith.constant dense<0.000000e+00> : vector<8x128xf32>
    %13 = tpu.matmul %11, %12, %cst_8 {dimension_numbers = #tpu.dot_dimension_numbers<[1], [0], [0], [1], [0, 0, 1, 1], [], []>} : vector<8x128xf32>, vector<128x128xf32>, vector<8x128xf32> -> vector<8x128xf32>
    %cst_9 = arith.constant 1.280000e+02 : f32
    %14 = vector.broadcast %cst_9 : f32 to vector<8x128xf32>
    %15 = arith.addf %13, %14 : vector<8x128xf32>
    %c0_10 = arith.constant 0 : index
    %c0_11 = arith.constant 0 : index
    %c0_12 = arith.constant 0 : index
    %16 = vector.load %arg6[%c0_10, %c0_11, %c0_12] : memref<1x8x128xf32, #tpu.memory_space<vmem>>, vector<1x8x128xf32>
    %17 = vector.shape_cast %16 : vector<1x8x128xf32> to vector<8x128xf32>
    %18 = vector.shape_cast %15 : vector<8x128xf32> to vector<1x8x128xf32>
    tpu.vector_store %arg6[%c0_10, %c0_11, %c0_12], %18 {strides = array<i32>} : memref<1x8x128xf32, #tpu.memory_space<vmem>>, vector<1x8x128xf32>,
    return
  }
  func.func @transform_0(%arg0: i32, %arg1: i32) -> (i32, i32, i32) {
    %c0_i32 = arith.constant 0 : i32
    %c0_i32_0 = arith.constant 0 : i32
    return %arg0, %arg1, %c0_i32 : i32, i32, i32
  }
  func.func @transform_1(%arg0: i32, %arg1: i32) -> (i32, i32) {
    %c0_i32 = arith.constant 0 : i32
    %c0_i32_0 = arith.constant 0 : i32
    %c0_i32_1 = arith.constant 0 : i32
    return %c0_i32, %c0_i32_0 : i32, i32
  }
  func.func @transform_2(%arg0: i32, %arg1: i32) -> (i32, i32) {
    %c0_i32 = arith.constant 0 : i32
    %c0_i32_0 = arith.constant 0 : i32
    %c0_i32_1 = arith.constant 0 : i32
    return %c0_i32, %c0_i32_0 : i32, i32
  }
  func.func @transform_3(%arg0: i32, %arg1: i32) -> (i32, i32) {
    %c0_i32 = arith.constant 0 : i32
    %c0_i32_0 = arith.constant 0 : i32
    %c0_i32_1 = arith.constant 0 : i32
    return %c0_i32, %c0_i32_0 : i32, i32
  }
  func.func @transform_4(%arg0: i32, %arg1: i32) -> (i32, i32, i32) {
    %c0_i32 = arith.constant 0 : i32
    %c0_i32_0 = arith.constant 0 : i32
    return %arg0, %arg1, %c0_i32 : i32, i32, i32
  }
}

module attributes {stable_mosaic.version = 11 : i64} {
  func.func @_jpeg_block_kernel(%arg0: i32, %arg1: i32, %arg2: memref<1x2x128xf32, #tpu.memory_space<vmem>>, %arg3: memref<128x128xf32, #tpu.memory_space<vmem>>, %arg4: memref<128x128xf32, #tpu.memory_space<vmem>>, %arg5: memref<1x128xf32, #tpu.memory_space<vmem>>, %arg6: memref<1x2x128xf32, #tpu.memory_space<vmem>>) attributes {dimension_semantics = [#tpu.dimension_semantics<parallel>, #tpu.dimension_semantics<parallel>], iteration_bounds = array<i64: 4, 1>, scalar_prefetch = 0 : i64, scratch_operands = 0 : i64, tpu.core_type = #tpu.core_type<tc>, window_params = [{transform_indices = @transform_0, window_bounds = array<i64: 1, 2, 128>}, {pipeline_mode = #tpu.pipeline_mode<synchronous>, transform_indices = @transform_1, window_bounds = array<i64: 128, 128>}, {pipeline_mode = #tpu.pipeline_mode<synchronous>, transform_indices = @transform_2, window_bounds = array<i64: 128, 128>}, {pipeline_mode = #tpu.pipeline_mode<synchronous>, transform_indices = @transform_3, window_bounds = array<i64: 1, 128>}, {transform_indices = @transform_4, window_bounds = array<i64: 1, 2, 128>}]} {
    %c0 = arith.constant 0 : index
    %c0_0 = arith.constant 0 : index
    %c0_1 = arith.constant 0 : index
    %0 = vector.load %arg2[%c0, %c0_0, %c0_1] : memref<1x2x128xf32, #tpu.memory_space<vmem>>, vector<1x2x128xf32>
    %1 = vector.shape_cast %0 : vector<1x2x128xf32> to vector<2x128xf32>
    %c0_2 = arith.constant 0 : index
    %c0_3 = arith.constant 0 : index
    %2 = vector.load %arg3[%c0_2, %c0_3] : memref<128x128xf32, #tpu.memory_space<vmem>>, vector<128x128xf32>
    %cst = arith.constant dense<0.000000e+00> : vector<2x128xf32>
    %3 = tpu.matmul %1, %2, %cst {dimension_numbers = #tpu.dot_dimension_numbers<[1], [0], [0], [1], [0, 0, 1, 1], [], []>} : vector<2x128xf32>, vector<128x128xf32>, vector<2x128xf32> -> vector<2x128xf32>
    %c0_4 = arith.constant 0 : index
    %c0_5 = arith.constant 0 : index
    %4 = vector.load %arg5[%c0_4, %c0_5] : memref<1x128xf32, #tpu.memory_space<vmem>>, vector<1x128xf32>
    %5 = vector.broadcast %4 : vector<1x128xf32> to vector<2x128xf32>
    %6 = arith.addf %3, %5 : vector<2x128xf32>
    %7 = math.roundeven %6 : vector<2x128xf32>
    %8 = arith.subf %6, %7 : vector<2x128xf32>
    %9 = arith.mulf %8, %8 : vector<2x128xf32>
    %10 = arith.mulf %9, %8 : vector<2x128xf32>
    %11 = arith.addf %7, %10 : vector<2x128xf32>
    %c0_6 = arith.constant 0 : index
    %c0_7 = arith.constant 0 : index
    %12 = vector.load %arg4[%c0_6, %c0_7] : memref<128x128xf32, #tpu.memory_space<vmem>>, vector<128x128xf32>
    %cst_8 = arith.constant dense<0.000000e+00> : vector<2x128xf32>
    %13 = tpu.matmul %11, %12, %cst_8 {dimension_numbers = #tpu.dot_dimension_numbers<[1], [0], [0], [1], [0, 0, 1, 1], [], []>} : vector<2x128xf32>, vector<128x128xf32>, vector<2x128xf32> -> vector<2x128xf32>
    %cst_9 = arith.constant 1.280000e+02 : f32
    %14 = vector.broadcast %cst_9 : f32 to vector<2x128xf32>
    %15 = arith.addf %13, %14 : vector<2x128xf32>
    %c0_10 = arith.constant 0 : index
    %c0_11 = arith.constant 0 : index
    %c0_12 = arith.constant 0 : index
    %16 = vector.load %arg6[%c0_10, %c0_11, %c0_12] : memref<1x2x128xf32, #tpu.memory_space<vmem>>, vector<1x2x128xf32>
    %17 = vector.shape_cast %16 : vector<1x2x128xf32> to vector<2x128xf32>
    %18 = vector.shape_cast %15 : vector<2x128xf32> to vector<1x2x128xf32>
    tpu.vector_store %arg6[%c0_10, %c0_11, %c0_12], %18 {strides = array<i32>} : memref<1x2x128xf32, #tpu.memory_space<vmem>>, vector<1x2x128xf32>,
    return
  }
  func.func @transform_0(%arg0: i32, %arg1: i32) -> (i32, i32, i32) {
    %c0_i32 = arith.constant 0 : i32
    %c0_i32_0 = arith.constant 0 : i32
    return %arg0, %arg1, %c0_i32 : i32, i32, i32
  }
  func.func @transform_1(%arg0: i32, %arg1: i32) -> (i32, i32) {
    %c0_i32 = arith.constant 0 : i32
    %c0_i32_0 = arith.constant 0 : i32
    %c0_i32_1 = arith.constant 0 : i32
    return %c0_i32, %c0_i32_0 : i32, i32
  }
  func.func @transform_2(%arg0: i32, %arg1: i32) -> (i32, i32) {
    %c0_i32 = arith.constant 0 : i32
    %c0_i32_0 = arith.constant 0 : i32
    %c0_i32_1 = arith.constant 0 : i32
    return %c0_i32, %c0_i32_0 : i32, i32
  }
  func.func @transform_3(%arg0: i32, %arg1: i32) -> (i32, i32) {
    %c0_i32 = arith.constant 0 : i32
    %c0_i32_0 = arith.constant 0 : i32
    %c0_i32_1 = arith.constant 0 : i32
    return %c0_i32, %c0_i32_0 : i32, i32
  }
  func.func @transform_4(%arg0: i32, %arg1: i32) -> (i32, i32, i32) {
    %c0_i32 = arith.constant 0 : i32
    %c0_i32_0 = arith.constant 0 : i32
    return %arg0, %arg1, %c0_i32 : i32, i32, i32
  }
}

module attributes {stable_mosaic.version = 11 : i64} {
  func.func @_ycbcr2rgb_kernel(%arg0: i32, %arg1: i32, %arg2: memref<1x32x32xf32, #tpu.memory_space<vmem>>, %arg3: memref<2x1x32x32xf32, #tpu.memory_space<vmem>>, %arg4: memref<1x3x32x32xf32, #tpu.memory_space<vmem>>) attributes {dimension_semantics = [#tpu.dimension_semantics<parallel>, #tpu.dimension_semantics<parallel>], iteration_bounds = array<i64: 2, 1>, scalar_prefetch = 0 : i64, scratch_operands = 0 : i64, tpu.core_type = #tpu.core_type<tc>, window_params = [{transform_indices = @transform_0, window_bounds = array<i64: 1, 32, 32>}, {transform_indices = @transform_1, window_bounds = array<i64: 2, 1, 32, 32>}, {transform_indices = @transform_2, window_bounds = array<i64: 1, 3, 32, 32>}]} {
    %c0 = arith.constant 0 : index
    %c0_0 = arith.constant 0 : index
    %c0_1 = arith.constant 0 : index
    %0 = vector.load %arg2[%c0, %c0_0, %c0_1] : memref<1x32x32xf32, #tpu.memory_space<vmem>>, vector<1x32x32xf32>
    %1 = vector.shape_cast %0 : vector<1x32x32xf32> to vector<32x32xf32>
    %c0_2 = arith.constant 0 : index
    %c0_3 = arith.constant 0 : index
    %c0_4 = arith.constant 0 : index
    %c0_5 = arith.constant 0 : index
    %2 = vector.load %arg3[%c0_2, %c0_3, %c0_4, %c0_5] : memref<2x1x32x32xf32, #tpu.memory_space<vmem>>, vector<1x1x32x32xf32>
    %3 = vector.shape_cast %2 : vector<1x1x32x32xf32> to vector<32x32xf32>
    %cst = arith.constant 1.280000e+02 : f32
    %4 = vector.broadcast %cst : f32 to vector<32x32xf32>
    %5 = arith.subf %3, %4 : vector<32x32xf32>
    %c1 = arith.constant 1 : index
    %c0_6 = arith.constant 0 : index
    %c0_7 = arith.constant 0 : index
    %c0_8 = arith.constant 0 : index
    %6 = vector.load %arg3[%c1, %c0_6, %c0_7, %c0_8] : memref<2x1x32x32xf32, #tpu.memory_space<vmem>>, vector<1x1x32x32xf32>
    %7 = vector.shape_cast %6 : vector<1x1x32x32xf32> to vector<32x32xf32>
    %cst_9 = arith.constant 1.280000e+02 : f32
    %8 = vector.broadcast %cst_9 : f32 to vector<32x32xf32>
    %9 = arith.subf %7, %8 : vector<32x32xf32>
    %cst_10 = arith.constant 1.402000e+00 : f32
    %10 = vector.broadcast %cst_10 : f32 to vector<32x32xf32>
    %11 = arith.mulf %10, %9 : vector<32x32xf32>
    %12 = arith.addf %1, %11 : vector<32x32xf32>
    %cst_11 = arith.constant 3.441360e-01 : f32
    %13 = vector.broadcast %cst_11 : f32 to vector<32x32xf32>
    %14 = arith.mulf %13, %5 : vector<32x32xf32>
    %15 = arith.subf %1, %14 : vector<32x32xf32>
    %cst_12 = arith.constant 7.141360e-01 : f32
    %16 = vector.broadcast %cst_12 : f32 to vector<32x32xf32>
    %17 = arith.mulf %16, %9 : vector<32x32xf32>
    %18 = arith.subf %15, %17 : vector<32x32xf32>
    %cst_13 = arith.constant 1.772000e+00 : f32
    %19 = vector.broadcast %cst_13 : f32 to vector<32x32xf32>
    %20 = arith.mulf %19, %5 : vector<32x32xf32>
    %21 = arith.addf %1, %20 : vector<32x32xf32>
    %cst_14 = arith.constant 0.000000e+00 : f32
    %cst_15 = arith.constant 2.550000e+02 : f32
    %22 = vector.broadcast %cst_14 : f32 to vector<32x32xf32>
    %23 = arith.maximumf %22, %12 : vector<32x32xf32>
    %24 = vector.broadcast %cst_15 : f32 to vector<32x32xf32>
    %25 = arith.minimumf %24, %23 : vector<32x32xf32>
    %cst_16 = arith.constant 2.550000e+02 : f32
    %26 = vector.broadcast %cst_16 : f32 to vector<32x32xf32>
    %27 = arith.divf %25, %26 : vector<32x32xf32>
    %c0_17 = arith.constant 0 : index
    %c0_18 = arith.constant 0 : index
    %c0_19 = arith.constant 0 : index
    %c0_20 = arith.constant 0 : index
    %28 = vector.load %arg4[%c0_17, %c0_18, %c0_19, %c0_20] : memref<1x3x32x32xf32, #tpu.memory_space<vmem>>, vector<1x1x32x32xf32>
    %29 = vector.shape_cast %28 : vector<1x1x32x32xf32> to vector<32x32xf32>
    %30 = vector.shape_cast %27 : vector<32x32xf32> to vector<1x1x32x32xf32>
    tpu.vector_store %arg4[%c0_17, %c0_18, %c0_19, %c0_20], %30 {strides = array<i32>} : memref<1x3x32x32xf32, #tpu.memory_space<vmem>>, vector<1x1x32x32xf32>,
    %cst_21 = arith.constant 0.000000e+00 : f32
    %cst_22 = arith.constant 2.550000e+02 : f32
    %31 = vector.broadcast %cst_21 : f32 to vector<32x32xf32>
    %32 = arith.maximumf %31, %18 : vector<32x32xf32>
    %33 = vector.broadcast %cst_22 : f32 to vector<32x32xf32>
    %34 = arith.minimumf %33, %32 : vector<32x32xf32>
    %cst_23 = arith.constant 2.550000e+02 : f32
    %35 = vector.broadcast %cst_23 : f32 to vector<32x32xf32>
    %36 = arith.divf %34, %35 : vector<32x32xf32>
    %c0_24 = arith.constant 0 : index
    %c1_25 = arith.constant 1 : index
    %c0_26 = arith.constant 0 : index
    %c0_27 = arith.constant 0 : index
    %37 = vector.load %arg4[%c0_24, %c1_25, %c0_26, %c0_27] : memref<1x3x32x32xf32, #tpu.memory_space<vmem>>, vector<1x1x32x32xf32>
    %38 = vector.shape_cast %37 : vector<1x1x32x32xf32> to vector<32x32xf32>
    %39 = vector.shape_cast %36 : vector<32x32xf32> to vector<1x1x32x32xf32>
    tpu.vector_store %arg4[%c0_24, %c1_25, %c0_26, %c0_27], %39 {strides = array<i32>} : memref<1x3x32x32xf32, #tpu.memory_space<vmem>>, vector<1x1x32x32xf32>,
    %cst_28 = arith.constant 0.000000e+00 : f32
    %cst_29 = arith.constant 2.550000e+02 : f32
    %40 = vector.broadcast %cst_28 : f32 to vector<32x32xf32>
    %41 = arith.maximumf %40, %21 : vector<32x32xf32>
    %42 = vector.broadcast %cst_29 : f32 to vector<32x32xf32>
    %43 = arith.minimumf %42, %41 : vector<32x32xf32>
    %cst_30 = arith.constant 2.550000e+02 : f32
    %44 = vector.broadcast %cst_30 : f32 to vector<32x32xf32>
    %45 = arith.divf %43, %44 : vector<32x32xf32>
    %c0_31 = arith.constant 0 : index
    %c2 = arith.constant 2 : index
    %c0_32 = arith.constant 0 : index
    %c0_33 = arith.constant 0 : index
    %46 = vector.load %arg4[%c0_31, %c2, %c0_32, %c0_33] : memref<1x3x32x32xf32, #tpu.memory_space<vmem>>, vector<1x1x32x32xf32>
    %47 = vector.shape_cast %46 : vector<1x1x32x32xf32> to vector<32x32xf32>
    %48 = vector.shape_cast %45 : vector<32x32xf32> to vector<1x1x32x32xf32>
    tpu.vector_store %arg4[%c0_31, %c2, %c0_32, %c0_33], %48 {strides = array<i32>} : memref<1x3x32x32xf32, #tpu.memory_space<vmem>>, vector<1x1x32x32xf32>,
    return
  }
  func.func @transform_0(%arg0: i32, %arg1: i32) -> (i32, i32, i32) {
    %c0_i32 = arith.constant 0 : i32
    %c0_i32_0 = arith.constant 0 : i32
    return %arg0, %arg1, %c0_i32 : i32, i32, i32
  }
  func.func @transform_1(%arg0: i32, %arg1: i32) -> (i32, i32, i32, i32) {
    %c0_i32 = arith.constant 0 : i32
    %c0_i32_0 = arith.constant 0 : i32
    %c0_i32_1 = arith.constant 0 : i32
    return %c0_i32, %arg0, %arg1, %c0_i32_0 : i32, i32, i32, i32
  }
  func.func @transform_2(%arg0: i32, %arg1: i32) -> (i32, i32, i32, i32) {
    %c0_i32 = arith.constant 0 : i32
    %c0_i32_0 = arith.constant 0 : i32
    %c0_i32_1 = arith.constant 0 : i32
    return %arg0, %c0_i32, %arg1, %c0_i32_0 : i32, i32, i32, i32
  }
}

</mosaic_0001>

<bundles_post_ra>
// kernel: _diff_jpeg_impl.4
= control target key start
LH: loop header
LB: loop body
LE: loop exit
PB: predicated region body
PF: predicated region fallthrough
CT: control target
= control target key end

     0   :  { %8 = vsyncpa [#allocation3], 0  ;;  %s925_s0 = inlined_call_operand.hbm [shape: f32[2,3,32,32], index: 0, kind: input, shape index: {}]   ;;  %s926_s1 = inlined_call_operand.vmem [shape: f32[2,32,32], index: 1, kind: output, shape index: {0}]   ;;  %s927_s2 = inlined_call_operand.vmem [shape: f32[2,2,32,32], index: 2, kind: output, shape index: {1}]  }
   0x1   :  { %10 = vsyncpa [#allocation3 + $0x1], 0  ;;  %s696_s9 = smov 0   ;;  %s698_s10 = smov 0  }
   0x2   :  { %s700_s11 = smov 0   ;;  %s702_s12 = smov 0  }
   0x3   :  { %s704_s13 = smov 0   ;;  %s706_s14 = smov 0  }
   0x4 LB: > { %s508_s15 = sadd.s32 4294967295, %s676_s14   ;;  %s28_s16 = sadd.s32 1, %s672_s13  ;;  %s676_s14 = sphi %s706_s14, %s16_s14   ;;  %s672_s13 = sphi %s704_s13, %s937_s13   ;;  %s668_s12 = sphi %s702_s12, %s936_s12   ;;  %s664_s11 = sphi %s700_s11, %s935_s11   ;;  %s660_s10 = sphi %s698_s10, %s934_s10   ;;  %s656_s9 = sphi %s696_s9, %s933_s9  }
   0x5   : > { %p30_p0 = scmp.ge.s32.totalorder %s28_s16, 2  ;;  %s37_s17 = sadd.s32 1, %s664_s11 }
   0x6   : > { %p44_p1 = scmp.ne.s32.totalorder %s664_s11, %s660_s10  ;;  %p45_p2 = scmp.eq.s32.totalorder %s676_s14, 0 }
   0x7   : > { %s939_s16 = smov (%p30_p0, %s28_s16), 0  ;;  %p50_p4 = scmp.ne.s32.totalorder %s660_s10, %s656_s9 }
   0x8   : > { %p732_p3 = por %p45_p2, %p44_p1  ;;  %s32_s19 = ssub.s32 %s672_s13, %s939_s16 }
   0x9   : > { %p51_p5 = scmp.eq.s32.totalorder %s508_s15, 0  ;;  %p35_p6 = scmp.eq.s32.totalorder %s32_s19, 0 }
   0xa   : > { %p104_p7 = scmp.eq.s32.totalorder %s508_s15, 1  ;;  %p545_p10 = scmp.lt.s32.totalorder %s676_s14, 2 }
   0xb   : > { %p739_p8 = por %p51_p5, %p50_p4  ;;  %s130_s23 = sand.u32 1, %s664_s11  }
   0xc   : > { %s744_s21 = scalar_select %p35_p6, %s664_s11, %s37_s17  }
   0xd   : > { %p746_p9 = por %p104_p7, %p44_p1  ;;  %s537_s24 = smul.u32 1536, %s672_s13 }
   0xe   : > { %s536_s25 = smul.u32 96, %s130_s23  ;;  %p760_p11 = pnand %p545_p10, %p732_p3 }
   0xf   : > { %s930_s22 = scalar_select %p746_p9, 1, 0 }
  0x10   : > { %s756_s28 = scalar_lea.hbm %s925_s0, %s537_s24  ;;  %s134_s30 = scalar_lea.vmem [#allocation2], %s536_s25 }
  0x11   : > { %s143_s3 = sshll.u32 %s134_s30, 4  ;;  %s766_s4 = scalar_lea.sflag [#allocation3], %s130_s23  ;;  %s764_s3 = int_to_ptr.vmem [resolvable:$true] %s143_s3 }
  0x12   : > { %s596_s5 = scalar_lea.hbm %s756_s28, 1536  ;;  %p598_p13 = pneg %p760_p11 }
  0x13   : > { %p597_p12 = scmp.ne.s32.totalorder %s756_s28, %s596_s5  ;;  %s601_s8 = scalar_lea.hbm %s925_s0, 3072 }
  0x14   : > { %p602_p2 = scmp.lt.u32.totalorder %s756_s28, %s925_s0  ;;  %p603_p3 = scmp.lt.u32.totalorder %s601_s8, %s596_s5 }
  0x15   : > { %p599_p0 = pnand %p598_p13, %p597_p12  ;;  %p605_p5 = scmp.lt.u32.totalorder %s596_s5, %s756_s28 }
  0x16   : > { %p604_p4 = por %p603_p3, %p602_p2 }
  0x17   : > { %p600_p1 = pneg %p599_p0 }
  0x18   : > { %p606_p6 = por %p605_p5, %p604_p4 }
  0x1a   : > { %p607_p7 = pnand %p606_p6, %p600_p1 }
  0x1c   : > { %610 = shalt.err (!%p607_p7)
}
  0x1d   : > { %s611_s17 = scalar_lea.vmem %s764_s3, 1536  ;;  %s678_s18 = smov [#allocation2]  }
  0x1e   : > { %p612_p10 = scmp.ne.s32.totalorder %s764_s3, %s611_s17  ;;  %s616_s19 = sshll.u32 %s678_s18, 4  ;;  %s617_s19 = int_to_ptr.vmem [resolvable:$false] %s616_s19 }
  0x1f   : > { %s618_s23 = scalar_lea.vmem %s617_s19, 3072  ;;  %p619_p9 = scmp.lt.s32.totalorder %s764_s3, %s617_s19 }
  0x20   : > { %p614_p12 = pnand %p612_p10, %p598_p13  ;;  %p620_p2 = scmp.lt.s32.totalorder %s618_s23, %s611_s17 }
  0x22   : > { %p615_p0 = pneg %p614_p12  ;;  %p621_p3 = por %p620_p2, %p619_p9 }
  0x24   : > { %p622_p4 = pnand %p621_p3, %p615_p0 }
  0x26   : > { %625 = shalt.err (!%p622_p4)
}
  0x27   : > { %s679_s24 = smov 128   ;;  %s680_s25 = smov 8  }
  0x28   : > { %544 = dma.hbm_to_vmem [thread:$0]  (!%p760_p11), %s756_s28, 1536, %s764_s3, %s766_s4, %s679_s24, %s679_s24, %s680_s25  }
  0x29   : > { %p513_p13 = scmp.ge.s32.totalorder %s676_s14, 1  ;;  %p151_p1 = scmp.lt.s32.totalorder %s676_s14, 3 }
  0x2b   : > { %p152_p5 = pnand %p513_p13, %p151_p1 }
  0x2c   : > { %s797_s26 = sand.u32 (!%p152_p5), 1, %s660_s10  }
  0x2d   : > { %155 = sbr.rel (%p152_p5) target bundleno = 90 (0x5a), region = 24  ;;  %s158_s30 = scalar_lea.sflag (!%p152_p5), [#allocation3], %s797_s26 }
  0x2e   : > { %s538_s27 = smul.u32 (!%p152_p5), 96, %s797_s26 }
  0x30   : > { %s801_s5 = scalar_lea.vmem (!%p152_p5), [#allocation2], %s538_s27 }
  0x34   : > { %651 = dma.done.wait (%p739_p8), %s158_s30, 1536  }
  0x35   : > { %653 = vsyncadd (%p739_p8), %s158_s30, 4294965760  ;;  %p192_p9 = scmp.lt.s32.totalorder %s668_s12, 1  ;;  %v202_v0 = vld [vmem:[%s801_s5] sm:$0xff]  ;;  %vm248_vm0 = vcmask 261120   ;;  %v203_v6 = vld [vmem:[%s801_s5 + $0x8] sm:$0xff]  ;;  %s514_s6 = sshll.u32 %s797_s26, 6 }
  0x36   : > { %v517_v1 = vld [vmem:[%s801_s5 + $0x20] sm:$0xff]  ;;  %v815_v3 = vmul.f32 255.0, %v202_v0  ;;  %v518_v7 = vld [vmem:[%s801_s5 + $0x28] sm:$0xff]  ;;  %v824_v9 = vmul.f32 255.0, %v203_v6  ;;  %v204_v12 = vld [vmem:[%s801_s5 + $0x10] sm:$0xff]  ;;  %s874_s7 = scalar_lea.vmem [#allocation4], %s514_s6 }
  0x37   : > { %s809_s28 = scalar_select %p192_p9, %s668_s12, 1  ;;  %v521_v2 = vld [vmem:[%s801_s5 + $0x40] sm:$0xff]  ;;  %v817_v4 = vmul.f32 255.0, %v517_v1  ;;  %v522_v8 = vld [vmem:[%s801_s5 + $0x48] sm:$0xff]  ;;  %v826_v10 = vmul.f32 255.0, %v518_v7  ;;  %v519_v13 = vld [vmem:[%s801_s5 + $0x30] sm:$0xff] }
  0x38   : > { %v819_v5 = vmul.f32 255.0, %v521_v2  ;;  %v828_v11 = vmul.f32 255.0, %v522_v8  ;;  %v523_v14 = vld [vmem:[%s801_s5 + $0x50] sm:$0xff]  ;;  %v228_v15 = vmul.f32 0.299, %v815_v3  ;;  %v208_v22 = vmul.f32 255.0, %v204_v12 }
  0x39   : > { %s534_s29 = sshll.u32 %s809_s28, 5  ;;  %v232_v16 = vmul.f32 0.587, %v817_v4  ;;  %v229_v18 = vmul.f32 0.299, %v824_v9  ;;  %v217_v23 = vmul.f32 255.0, %v519_v13 }
  0x3a   : > { %v240_v17 = vmul.f32 0.114, %v819_v5  ;;  %v233_v19 = vmul.f32 0.587, %v826_v10  ;;  %v241_v20 = vmul.f32 0.114, %v828_v11  ;;  %s849_s4 = scalar_lea.vmem %s926_s1, %s534_s29 }
  0x3b   : > { %v236_v21 = vadd.f32 %v232_v16, %v228_v15  ;;  %v839_v24 = vmul.f32 255.0, %v523_v14  ;;  %v205_v25 = vld [vmem:[%s801_s5 + $0x18] sm:$0xff]  ;;  %v230_v33 = vmul.f32 0.299, %v208_v22  ;;  %v234_v34 = vmul.f32 0.587, %v217_v23 }
  0x3c   : > { %v520_v26 = vld [vmem:[%s801_s5 + $0x38] sm:$0xff]  ;;  %v237_v28 = vadd.f32 %v233_v19, %v229_v18  ;;  %v209_v29 = vmul.f32 255.0, %v205_v25  ;;  %v253_v41 = vmul.f32 -0.168736, %v815_v3  ;;  %v257_v42 = vmul.f32 0.331264, %v817_v4 }
  0x3d   : > { %v524_v27 = vld [vmem:[%s801_s5 + $0x58] sm:$0xff]  ;;  %v218_v30 = vmul.f32 255.0, %v520_v26  ;;  %v244_v32 = vadd.f32 %v240_v17, %v236_v21  ;;  %v242_v35 = vmul.f32 0.114, %v839_v24  ;;  %v238_v40 = vadd.f32 %v234_v34, %v230_v33  ;;  %p932_p8 = scmp.ne.s32.totalorder %s930_s22, 0 }
  0x3e   : > { %v227_v31 = vmul.f32 255.0, %v524_v27  ;;  %v245_v36 = vadd.f32 %v241_v20, %v237_v28  ;;  %v231_v37 = vmul.f32 0.299, %v209_v29  ;;  %v265_v43 = vmul.f32 0.5, %v819_v5  ;;  %s535_s8 = sshll.u32 (%p932_p8), %s668_s12, 5 }
  0x3f   : > { %v235_v38 = vmul.f32 0.587, %v218_v30  ;;  %249 = vst.msk [vmem:[%s849_s4] sm:$0xff] %vm248_vm0, %v244_v32  ;;  %v254_v45 = vmul.f32 -0.168736, %v824_v9  ;;  %v266_v47 = vmul.f32 0.5, %v828_v11  ;;  %v246_v48 = vadd.f32 %v242_v35, %v238_v40  ;;  %s334_s17 = scalar_lea.vmem (%p932_p8), %s927_s2, %s535_s8 }
  0x40   : > { %v243_v39 = vmul.f32 0.114, %v227_v31  ;;  %250 = vst.msk [vmem:[%s849_s4 + $0x8] sm:$0xff] %vm248_vm0, %v245_v36  ;;  %v258_v46 = vmul.f32 0.331264, %v826_v10  ;;  %v261_v49 = vsub.f32 %v253_v41, %v257_v42  ;;  %v267_v54 = vmul.f32 0.5, %v839_v24 }
  0x41   : > { %v239_v44 = vadd.f32 %v235_v38, %v231_v37  ;;  %v255_v50 = vmul.f32 -0.168736, %v208_v22  ;;  %v259_v51 = vmul.f32 0.331264, %v217_v23  ;;  %v256_v55 = vmul.f32 -0.168736, %v209_v29 }
  0x42   : > { %v262_v53 = vsub.f32 %v254_v45, %v258_v46  ;;  %251 = vst.msk [vmem:[%s849_s4 + $0x10] sm:$0xff] %vm248_vm0, %v246_v48  ;;  %v269_v56 = vadd.f32 %v265_v43, %v261_v49  ;;  %v260_v58 = vmul.f32 0.331264, %v218_v30  ;;  %v268_v59 = vmul.f32 0.5, %v227_v31 }
  0x43   : > { %v247_v52 = vadd.f32 %v243_v39, %v239_v44  ;;  %v263_v57 = vsub.f32 %v255_v50, %v259_v51  ;;  %v281_v61 = vmul.f32 0.5, %v815_v3  ;;  %v285_v62 = vmul.f32 0.418688, %v817_v4 }
  0x44   : > { %v270_v60 = vadd.f32 %v266_v47, %v262_v53  ;;  %v293_v63 = vmul.f32 0.081312, %v819_v5  ;;  %v273_v0 = vadd.f32 128.0, %v269_v56  ;;  %v264_v2 = vsub.f32 %v256_v55, %v260_v58 }
  0x45   : > { %252 = vst.msk [vmem:[%s849_s4 + $0x18] sm:$0xff] %vm248_vm0, %v247_v52  ;;  %v271_v1 = vadd.f32 %v267_v54, %v263_v57  ;;  %v282_v6 = vmul.f32 0.5, %v824_v9  ;;  %v289_v8 = vsub.f32 %v281_v61, %v285_v62  ;;  %v286_v12 = vmul.f32 0.418688, %v826_v10 }
  0x46   : > { %v274_v7 = vadd.f32 128.0, %v270_v60  ;;  %v294_v13 = vmul.f32 0.081312, %v828_v11  ;;  %277 = vst.msk [vmem:[%s874_s7] sm:$0xff] %vm248_vm0, %v273_v0  ;;  %v272_v4 = vadd.f32 %v268_v59, %v264_v2  ;;  %v283_v5 = vmul.f32 0.5, %v208_v22 }
  0x47   : > { %v275_v3 = vadd.f32 128.0, %v271_v1  ;;  %v287_v14 = vmul.f32 0.418688, %v217_v23  ;;  %v297_v9 = vsub.f32 %v289_v8, %v293_v63  ;;  %v290_v15 = vsub.f32 %v282_v6, %v286_v12 }
  0x48   : > { %278 = vst.msk [vmem:[%s874_s7 + $0x8] sm:$0xff] %vm248_vm0, %v274_v7  ;;  %v295_v10 = vmul.f32 0.081312, %v839_v24  ;;  %v284_v11 = vmul.f32 0.5, %v209_v29  ;;  %v276_v16 = vadd.f32 128.0, %v272_v4 }
  0x49   : > { %279 = vst.msk [vmem:[%s874_s7 + $0x10] sm:$0xff] %vm248_vm0, %v275_v3  ;;  %v291_v17 = vsub.f32 %v283_v5, %v287_v14  ;;  %v288_v18 = vmul.f32 0.418688, %v218_v30  ;;  %v296_v19 = vmul.f32 0.081312, %v227_v31  ;;  %v301_v20 = vadd.f32 128.0, %v297_v9 }
  0x4a   : > { %v298_v21 = vsub.f32 %v290_v15, %v294_v13  ;;  %280 = vst.msk [vmem:[%s874_s7 + $0x18] sm:$0xff] %vm248_vm0, %v276_v16 }
  0x4b   : > { %v299_v22 = vsub.f32 %v291_v17, %v295_v10  ;;  %v292_v23 = vsub.f32 %v284_v11, %v288_v18  ;;  %525 = vst.msk [vmem:[%s874_s7 + $0x20] sm:$0xff] %vm248_vm0, %v301_v20  ;;  %329 = sbr.rel (!%p932_p8) target bundleno = 90 (0x5a), region = 36 }
  0x4c   : > { %v302_v25 = vadd.f32 128.0, %v298_v21 }
  0x4d   : > { %v303_v24 = vadd.f32 128.0, %v299_v22  ;;  %v300_v26 = vsub.f32 %v292_v23, %v296_v19  ;;  %v376_v28 = vld [vmem:[%s874_s7] sm:$0xff] (%p932_p8) }
  0x4e   : > { %526 = vst.msk [vmem:[%s874_s7 + $0x28] sm:$0xff] %vm248_vm0, %v302_v25  ;;  %377 = vst [vmem:[%s334_s17] sm:$0xff] (%p932_p8), %v376_v28 }
  0x4f   : > { %527 = vst.msk [vmem:[%s874_s7 + $0x30] sm:$0xff] %vm248_vm0, %v303_v24  ;;  %v304_v27 = vadd.f32 128.0, %v300_v26  ;;  %v378_v29 = vld [vmem:[%s874_s7 + $0x8] sm:$0xff] (%p932_p8) }
  0x50   : > { %v380_v30 = vld [vmem:[%s874_s7 + $0x10] sm:$0xff] (%p932_p8)  ;;  %379 = vst [vmem:[%s334_s17 + $0x8] sm:$0xff] (%p932_p8), %v378_v29 }
  0x51   : > { %528 = vst.msk [vmem:[%s874_s7 + $0x38] sm:$0xff] %vm248_vm0, %v304_v27  ;;  %v382_v31 = vld [vmem:[%s874_s7 + $0x18] sm:$0xff] (%p932_p8)  ;;  %381 = vst [vmem:[%s334_s17 + $0x10] sm:$0xff] (%p932_p8), %v380_v30 }
  0x52   : > { %v384_v32 = vld [vmem:[%s874_s7 + $0x20] sm:$0xff]  ;;  %383 = vst [vmem:[%s334_s17 + $0x18] sm:$0xff] %v382_v31 }
  0x53   : > { %385 = vst [vmem:[%s334_s17 + $0x40] sm:$0xff] %v384_v32 }
  0x55   : > { %v386_v33 = vld [vmem:[%s874_s7 + $0x28] sm:$0xff] }
  0x56   : > { %387 = vst [vmem:[%s334_s17 + $0x48] sm:$0xff] %v386_v33  ;;  %v388_v34 = vld [vmem:[%s874_s7 + $0x30] sm:$0xff] }
  0x57   : > { %389 = vst [vmem:[%s334_s17 + $0x50] sm:$0xff] %v388_v34 }
  0x58   : > { %v390_v35 = vld [vmem:[%s874_s7 + $0x38] sm:$0xff] }
  0x59   : > { %391 = vst [vmem:[%s334_s17 + $0x58] sm:$0xff] %v390_v35 }
  0x5a PF: > { %s16_s14 = sadd.s32 1, %s676_s14   ;;  %s933_s9 = smov %s660_s10 }
  0x5b   : > { %p13_p11 = scmp.ge.s32.totalorder %s16_s14, 4   ;;  %s934_s10 = smov %s664_s11 }
  0x5c   : > { %s935_s11 = smov %s744_s21  ;;  %s936_s12 = smov %s672_s13 }
  0x5d   : > { %s937_s13 = smov %s939_s16  ;;  %15 = sbr.rel (!%p13_p11) target bundleno = 4 (0x4), region = 117 }
  0x64   :  { %419 = vsyncpa [#allocation3], 1 }
  0x65   :  { %421 = vsyncpa [#allocation3 + $0x1], 1 }

// kernel: _diff_jpeg_impl.5
= control target key start
LH: loop header
LB: loop body
LE: loop exit
PB: predicated region body
PF: predicated region fallthrough
CT: control target
= control target key end

     0   :  { %s726_s15 = smov 0   ;;  %s728_s16 = smov 0   ;;  %s885_s0 = inlined_call_operand.vmem [shape: f32[2,8,128], index: 0, kind: input, shape index: {}]   ;;  %s886_s1 = inlined_call_operand.vmem [shape: f32[128,128], index: 1, kind: input, shape index: {}]   ;;  %s887_s2 = inlined_call_operand.vmem [shape: f32[128,128], index: 2, kind: input, shape index: {}]   ;;  %s888_s3 = inlined_call_operand.vmem [shape: f32[1,128], index: 3, kind: input, shape index: {}]   ;;  %s889_s4 = inlined_call_operand.vmem [shape: f32[2,8,128], index: 4, kind: output, shape index: {}]  }
   0x1   :  { %s730_s17 = smov 0  }
   0x2 LB: > { %s26_s18 = sadd.s32 1, %s692_s16  ;;  %p488_p0 = scmp.ge.s32.totalorder %s696_s17, 1  ;;  %s696_s17 = sphi %s730_s17, %s14_s17   ;;  %s692_s16 = sphi %s728_s16, %s891_s16   ;;  %s688_s15 = sphi %s726_s15, %s890_s15  }
   0x3   : > { %p28_p1 = scmp.ge.s32.totalorder %s26_s18, 2  ;;  %p180_p2 = scmp.lt.s32.totalorder %s696_s17, 3 }
   0x5   : > { %s893_s18 = smov (%p28_p1, %s26_s18), 0  ;;  %p181_p3 = pnand %p488_p0, %p180_p2 }
   0x6   : > { %v225_v0 = vld [vmem:[%s886_s1] sm:$0xff] (!%p181_p3)  ;;  %v226_v1 = vld [vmem:[%s886_s1 + $0x8] sm:$0xff] (!%p181_p3)  ;;  %v227_v2 = vld [vmem:[%s886_s1 + $0x10] sm:$0xff] (!%p181_p3)  ;;  %v698_v3 = vmov (!%p181_p3), 0.0|0.0   ;;  %vm699_vm0 = vmmov (!%p181_p3), 0   ;;  %v700_v6 = vmov (!%p181_p3), 0.0  }
   0x7   : > { %184 = sbr.rel (%p181_p3) target bundleno = 479 (0x1df), region = 36  ;;  %598 = vmatprep.subr.bf16.mxu0 (!%p181_p3), %v698_v3  ;;  %v599_v4 = vpack.c.bf16 (!%p181_p3), %v226_v1, %v225_v0  ;;  %v228_v5 = vld [vmem:[%s886_s1 + $0x18] sm:$0xff] (!%p181_p3)  ;;  %560 = vmatprep.mubr.msk.f32.mxu0 (!%p181_p3), %vm699_vm0, %v700_v6  ;;  %v229_v8 = vld [vmem:[%s886_s1 + $0x20] sm:$0xff] (!%p181_p3)  ;;  %v230_v9 = vld [vmem:[%s886_s1 + $0x28] sm:$0xff] (!%p181_p3)  ;;  %p210_p4 = scmp.lt.s32.totalorder (!%p181_p3), %s688_s15, 1 }
   0x8   : > { %622 = vmatprep.subr.bf16.mxu1 (!%p181_p3), %v698_v3  ;;  %595 = vmatprep.mubr.msk.f32.mxu1 (!%p181_p3), %vm699_vm0, %v700_v6  ;;  %v602_v7 = vpack.c.bf16 (!%p181_p3), %v228_v5, %v227_v2  ;;  %v323_v10 = vld [vmem:[%s887_s2] sm:$0xff] (!%p181_p3)  ;;  %v324_v11 = vld [vmem:[%s887_s2 + $0x8] sm:$0xff] (!%p181_p3)  ;;  %v325_v13 = vld [vmem:[%s887_s2 + $0x10] sm:$0xff] (!%p181_p3)  ;;  %v605_v15 = vpack.c.bf16 (!%p181_p3), %v230_v9, %v229_v8 }
   0x9   : > { %600 = vmatpush3.bf16.msra.mxu0 (!%p181_p3), %v599_v4  ;;  %v623_v12 = vpack.c.bf16 (!%p181_p3), %v324_v11, %v323_v10  ;;  %v326_v14 = vld [vmem:[%s887_s2 + $0x18] sm:$0xff] (!%p181_p3)  ;;  %v231_v16 = vld [vmem:[%s886_s1 + $0x30] sm:$0xff] (!%p181_p3)  ;;  %v327_v19 = vld [vmem:[%s887_s2 + $0x20] sm:$0xff] (!%p181_p3) }
   0xa   : > { %601 = vmatprep.subr.bf16.mxu0 (!%p181_p3), %v698_v3  ;;  %v232_v17 = vld [vmem:[%s886_s1 + $0x38] sm:$0xff] (!%p181_p3)  ;;  %v626_v18 = vpack.c.bf16 (!%p181_p3), %v326_v14, %v325_v13  ;;  %v328_v20 = vld [vmem:[%s887_s2 + $0x28] sm:$0xff] (!%p181_p3)  ;;  %v233_v22 = vld [vmem:[%s886_s1 + $0x40] sm:$0xff] (!%p181_p3) }
   0xb   : > { %624 = vmatpush3.bf16.msra.mxu1 (!%p181_p3), %v623_v12  ;;  %v608_v21 = vpack.c.bf16 (!%p181_p3), %v232_v17, %v231_v16  ;;  %v234_v23 = vld [vmem:[%s886_s1 + $0x48] sm:$0xff] (!%p181_p3)  ;;  %v629_v24 = vpack.c.bf16 (!%p181_p3), %v328_v20, %v327_v19  ;;  %v329_v25 = vld [vmem:[%s887_s2 + $0x30] sm:$0xff] (!%p181_p3)  ;;  %v330_v26 = vld [vmem:[%s887_s2 + $0x38] sm:$0xff] (!%p181_p3) }
   0xc   : > { %625 = vmatprep.subr.bf16.mxu1 (!%p181_p3), %v698_v3  ;;  %v611_v27 = vpack.c.bf16 (!%p181_p3), %v234_v23, %v233_v22  ;;  %v235_v28 = vld [vmem:[%s886_s1 + $0x50] sm:$0xff] (!%p181_p3)  ;;  %v236_v29 = vld [vmem:[%s886_s1 + $0x58] sm:$0xff] (!%p181_p3)  ;;  %v632_v30 = vpack.c.bf16 (!%p181_p3), %v330_v26, %v329_v25  ;;  %v331_v31 = vld [vmem:[%s887_s2 + $0x40] sm:$0xff] (!%p181_p3) }
   0xd   : > { %603 = vmatpush3.bf16.msra.mxu0 (!%p181_p3), %v602_v7  ;;  %v332_v32 = vld [vmem:[%s887_s2 + $0x48] sm:$0xff] (!%p181_p3)  ;;  %v614_v33 = vpack.c.bf16 (!%p181_p3), %v236_v29, %v235_v28  ;;  %v237_v34 = vld [vmem:[%s886_s1 + $0x60] sm:$0xff] (!%p181_p3)  ;;  %v239_v38 = vld [vmem:[%s886_s1 + $0x70] sm:$0xff] (!%p181_p3) }
   0xe   : > { %604 = vmatprep.subr.bf16.mxu0 %v698_v3  ;;  %v238_v35 = vld [vmem:[%s886_s1 + $0x68] sm:$0xff]  ;;  %v635_v36 = vpack.c.bf16 %v332_v32, %v331_v31  ;;  %s895_s15 = smov (!%p210_p4, %s688_s15), 1  ;;  %v240_v39 = vld [vmem:[%s886_s1 + $0x78] sm:$0xff]  ;;  %v333_v42 = vld [vmem:[%s887_s2 + $0x50] sm:$0xff] }
   0xf   : > { %627 = vmatpush3.bf16.msra.mxu1 %v626_v18  ;;  %v617_v37 = vpack.c.bf16 %v238_v35, %v237_v34  ;;  %s489_s27 = sshll.u32 %s895_s15, 3  ;;  %v620_v40 = vpack.c.bf16 %v240_v39, %v239_v38  ;;  %v334_v43 = vld [vmem:[%s887_s2 + $0x58] sm:$0xff]  ;;  %v335_v45 = vld [vmem:[%s887_s2 + $0x60] sm:$0xff]  ;;  %v336_v46 = vld [vmem:[%s887_s2 + $0x68] sm:$0xff] }
  0x10   : > { %628 = vmatprep.subr.bf16.mxu1 %v698_v3  ;;  %s216_s30 = scalar_lea.vmem %s885_s0, %s489_s27  ;;  %v638_v44 = vpack.c.bf16 %v334_v43, %v333_v42  ;;  %v641_v47 = vpack.c.bf16 %v336_v46, %v335_v45  ;;  %v337_v48 = vld [vmem:[%s887_s2 + $0x70] sm:$0xff]  ;;  %v338_v49 = vld [vmem:[%s887_s2 + $0x78] sm:$0xff]  ;;  %v491_v51 = vld [vmem:[%s888_s3] ss:$0 sm:$0xff]  ;;  %s223_s25 = scalar_lea.vmem %s889_s4, %s489_s27 }
  0x11   : > { %606 = vmatpush3.bf16.msra.mxu0 %v605_v15  ;;  %v224_v41 = vld [vmem:[%s216_s30] sm:$0xff]  ;;  %v644_v50 = vpack.c.bf16 %v338_v49, %v337_v48 }
  0x12   : > { %607 = vmatprep.subr.bf16.mxu0 %v698_v3 }
  0x13   : > { %630 = vmatpush3.bf16.msra.mxu1 %v629_v24 }
  0x14   : > { %631 = vmatprep.subr.bf16.mxu1 %v698_v3 }
  0x15   : > { %609 = vmatpush3.bf16.msra.mxu0 %v608_v21 }
  0x16   : > { %610 = vmatprep.subr.bf16.mxu0 %v698_v3 }
  0x17   : > { %633 = vmatpush3.bf16.msra.mxu1 %v632_v30 }
  0x18   : > { %634 = vmatprep.subr.bf16.mxu1 %v698_v3 }
  0x19   : > { %612 = vmatpush3.bf16.msra.mxu0 %v611_v27 }
  0x1a   : > { %613 = vmatprep.subr.bf16.mxu0 %v698_v3 }
  0x1b   : > { %636 = vmatpush3.bf16.msra.mxu1 %v635_v36 }
  0x1c   : > { %637 = vmatprep.subr.bf16.mxu1 %v698_v3 }
  0x1d   : > { %615 = vmatpush3.bf16.msra.mxu0 %v614_v33 }
  0x1e   : > { %616 = vmatprep.subr.bf16.mxu0 %v698_v3 }
  0x1f   : > { %639 = vmatpush3.bf16.msra.mxu1 %v638_v44 }
  0x20   : > { %640 = vmatprep.subr.bf16.mxu1 %v698_v3 }
  0x21   : > { %618 = vmatpush3.bf16.msra.mxu0 %v617_v37 }
  0x22   : > { %619 = vmatprep.subr.bf16.mxu0 %v698_v3 }
  0x23   : > { %642 = vmatpush3.bf16.msra.mxu1 %v641_v47 }
  0x24   : > { %643 = vmatprep.subr.bf16.mxu1 %v698_v3 }
  0x25   : > { %621 = vmatpush3.bf16.msra.mxu0 %v620_v40 }
  0x27   : > { %645 = vmatpush3.bf16.msra.mxu1 %v644_v50 }
  0x28   : > { %561 = vmatmul.mubr.f32.vlgmr.msra.gmra.mrb[0].mxu0 %v224_v41 }
  0xfb   : > { %v314_v52 = vpop.f32.mrb[0].mxu0 }
  0xfc   : > { %v315_v53 = vadd.f32 %v491_v51, %v314_v52  ;;  %v562_v54 = vpop.f32.mrb[1].mxu0 }
  0xfe   : > { %v646_v55 = vround.rtne.f32 %v315_v53 }
 0x100   : > { %v319_v56 = vsub.f32 %v315_v53, %v646_v55 }
 0x102   : > { %v320_v57 = vmul.f32 %v319_v56, %v319_v56 }
 0x104   : > { %v321_v58 = vmul.f32 %v320_v57, %v319_v56 }
 0x106   : > { %v322_v59 = vadd.f32 %v646_v55, %v321_v58 }
 0x108   : > { %596 = vmatmul.mubr.f32.vlgmr.msra.gmra.mrb[0].mxu1 %v322_v59 }
 0x1db   : > { %v405_v60 = vpop.f32.mrb[0].mxu1 }
 0x1dc   : > { %v406_v61 = vadd.f32 128.0, %v405_v60  ;;  %v597_v62 = vpop.f32.mrb[1].mxu1 }
 0x1de   : > { %409 = vst [vmem:[%s223_s25] sm:$0xff] %v406_v61 }
 0x1df PF: > { %s14_s17 = sadd.s32 1, %s696_s17   ;;  %s890_s15 = smov %s692_s16 }
 0x1e0   : > { %p11_p5 = scmp.ge.s32.totalorder %s14_s17, 4   ;;  %s891_s16 = smov %s893_s18 }
 0x1e2   :  { %13 = sbr.rel (!%p11_p5) target bundleno = 2 (0x2), region = 66 }

// kernel: _diff_jpeg_impl.6
= control target key start
LH: loop header
LB: loop body
LE: loop exit
PB: predicated region body
PF: predicated region fallthrough
CT: control target
= control target key end

     0   :  { %s726_s15 = smov 0   ;;  %s728_s16 = smov 0   ;;  %s885_s0 = inlined_call_operand.vmem [shape: f32[4,2,128], index: 0, kind: input, shape index: {}]   ;;  %s886_s1 = inlined_call_operand.vmem [shape: f32[128,128], index: 1, kind: input, shape index: {}]   ;;  %s887_s2 = inlined_call_operand.vmem [shape: f32[128,128], index: 2, kind: input, shape index: {}]   ;;  %s888_s3 = inlined_call_operand.vmem [shape: f32[1,128], index: 3, kind: input, shape index: {}]   ;;  %s889_s4 = inlined_call_operand.vmem [shape: f32[4,2,128], index: 4, kind: output, shape index: {}]  }
   0x1   :  { %s730_s17 = smov 0  }
   0x2 LB: > { %s26_s18 = sadd.s32 1, %s692_s16  ;;  %p488_p0 = scmp.ge.s32.totalorder %s696_s17, 1  ;;  %s696_s17 = sphi %s730_s17, %s14_s17   ;;  %s692_s16 = sphi %s728_s16, %s891_s16   ;;  %s688_s15 = sphi %s726_s15, %s890_s15  }
   0x3   : > { %p28_p1 = scmp.ge.s32.totalorder %s26_s18, 4  ;;  %p180_p2 = scmp.lt.s32.totalorder %s696_s17, 5 }
   0x5   : > { %s893_s18 = smov (%p28_p1, %s26_s18), 0  ;;  %p181_p3 = pnand %p488_p0, %p180_p2 }
   0x6   : > { %v225_v0 = vld [vmem:[%s886_s1] sm:$0xff] (!%p181_p3)  ;;  %v226_v1 = vld [vmem:[%s886_s1 + $0x8] sm:$0xff] (!%p181_p3)  ;;  %v227_v2 = vld [vmem:[%s886_s1 + $0x10] sm:$0xff] (!%p181_p3)  ;;  %v698_v3 = vmov (!%p181_p3), 0.0|0.0   ;;  %vm699_vm0 = vmmov (!%p181_p3), 0   ;;  %v700_v6 = vmov (!%p181_p3), 0.0  }
   0x7   : > { %184 = sbr.rel (%p181_p3) target bundleno = 479 (0x1df), region = 36  ;;  %598 = vmatprep.subr.bf16.mxu0 (!%p181_p3), %v698_v3  ;;  %v599_v4 = vpack.c.bf16 (!%p181_p3), %v226_v1, %v225_v0  ;;  %v228_v5 = vld [vmem:[%s886_s1 + $0x18] sm:$0xff] (!%p181_p3)  ;;  %560 = vmatprep.mubr.msk.f32.mxu0 (!%p181_p3), %vm699_vm0, %v700_v6  ;;  %v229_v8 = vld [vmem:[%s886_s1 + $0x20] sm:$0xff] (!%p181_p3)  ;;  %v230_v9 = vld [vmem:[%s886_s1 + $0x28] sm:$0xff] (!%p181_p3)  ;;  %p210_p4 = scmp.lt.s32.totalorder (!%p181_p3), %s688_s15, 3 }
   0x8   : > { %622 = vmatprep.subr.bf16.mxu1 (!%p181_p3), %v698_v3  ;;  %595 = vmatprep.mubr.msk.f32.mxu1 (!%p181_p3), %vm699_vm0, %v700_v6  ;;  %v602_v7 = vpack.c.bf16 (!%p181_p3), %v228_v5, %v227_v2  ;;  %v323_v10 = vld [vmem:[%s887_s2] sm:$0xff] (!%p181_p3)  ;;  %v324_v11 = vld [vmem:[%s887_s2 + $0x8] sm:$0xff] (!%p181_p3)  ;;  %v325_v13 = vld [vmem:[%s887_s2 + $0x10] sm:$0xff] (!%p181_p3)  ;;  %v605_v15 = vpack.c.bf16 (!%p181_p3), %v230_v9, %v229_v8 }
   0x9   : > { %600 = vmatpush3.bf16.msra.mxu0 (!%p181_p3), %v599_v4  ;;  %v623_v12 = vpack.c.bf16 (!%p181_p3), %v324_v11, %v323_v10  ;;  %v326_v14 = vld [vmem:[%s887_s2 + $0x18] sm:$0xff] (!%p181_p3)  ;;  %v231_v16 = vld [vmem:[%s886_s1 + $0x30] sm:$0xff] (!%p181_p3)  ;;  %v327_v19 = vld [vmem:[%s887_s2 + $0x20] sm:$0xff] (!%p181_p3) }
   0xa   : > { %601 = vmatprep.subr.bf16.mxu0 (!%p181_p3), %v698_v3  ;;  %v232_v17 = vld [vmem:[%s886_s1 + $0x38] sm:$0xff] (!%p181_p3)  ;;  %v626_v18 = vpack.c.bf16 (!%p181_p3), %v326_v14, %v325_v13  ;;  %v328_v20 = vld [vmem:[%s887_s2 + $0x28] sm:$0xff] (!%p181_p3)  ;;  %v233_v22 = vld [vmem:[%s886_s1 + $0x40] sm:$0xff] (!%p181_p3) }
   0xb   : > { %624 = vmatpush3.bf16.msra.mxu1 (!%p181_p3), %v623_v12  ;;  %v608_v21 = vpack.c.bf16 (!%p181_p3), %v232_v17, %v231_v16  ;;  %v234_v23 = vld [vmem:[%s886_s1 + $0x48] sm:$0xff] (!%p181_p3)  ;;  %v629_v24 = vpack.c.bf16 (!%p181_p3), %v328_v20, %v327_v19  ;;  %v329_v25 = vld [vmem:[%s887_s2 + $0x30] sm:$0xff] (!%p181_p3)  ;;  %v330_v26 = vld [vmem:[%s887_s2 + $0x38] sm:$0xff] (!%p181_p3) }
   0xc   : > { %625 = vmatprep.subr.bf16.mxu1 (!%p181_p3), %v698_v3  ;;  %v611_v27 = vpack.c.bf16 (!%p181_p3), %v234_v23, %v233_v22  ;;  %v235_v28 = vld [vmem:[%s886_s1 + $0x50] sm:$0xff] (!%p181_p3)  ;;  %v236_v29 = vld [vmem:[%s886_s1 + $0x58] sm:$0xff] (!%p181_p3)  ;;  %v632_v30 = vpack.c.bf16 (!%p181_p3), %v330_v26, %v329_v25  ;;  %v331_v31 = vld [vmem:[%s887_s2 + $0x40] sm:$0xff] (!%p181_p3) }
   0xd   : > { %603 = vmatpush3.bf16.msra.mxu0 (!%p181_p3), %v602_v7  ;;  %v332_v32 = vld [vmem:[%s887_s2 + $0x48] sm:$0xff] (!%p181_p3)  ;;  %v614_v33 = vpack.c.bf16 (!%p181_p3), %v236_v29, %v235_v28  ;;  %v237_v34 = vld [vmem:[%s886_s1 + $0x60] sm:$0xff] (!%p181_p3)  ;;  %v239_v38 = vld [vmem:[%s886_s1 + $0x70] sm:$0xff] (!%p181_p3) }
   0xe   : > { %604 = vmatprep.subr.bf16.mxu0 %v698_v3  ;;  %v238_v35 = vld [vmem:[%s886_s1 + $0x68] sm:$0xff]  ;;  %v635_v36 = vpack.c.bf16 %v332_v32, %v331_v31  ;;  %s895_s15 = smov (!%p210_p4, %s688_s15), 3  ;;  %v240_v39 = vld [vmem:[%s886_s1 + $0x78] sm:$0xff]  ;;  %v333_v42 = vld [vmem:[%s887_s2 + $0x50] sm:$0xff] }
   0xf   : > { %627 = vmatpush3.bf16.msra.mxu1 %v626_v18  ;;  %v617_v37 = vpack.c.bf16 %v238_v35, %v237_v34  ;;  %s489_s27 = sshll.u32 %s895_s15, 1  ;;  %v620_v40 = vpack.c.bf16 %v240_v39, %v239_v38  ;;  %v334_v43 = vld [vmem:[%s887_s2 + $0x58] sm:$0xff]  ;;  %v335_v45 = vld [vmem:[%s887_s2 + $0x60] sm:$0xff]  ;;  %v336_v46 = vld [vmem:[%s887_s2 + $0x68] sm:$0xff] }
  0x10   : > { %628 = vmatprep.subr.bf16.mxu1 %v698_v3  ;;  %s216_s30 = scalar_lea.vmem %s885_s0, %s489_s27  ;;  %v638_v44 = vpack.c.bf16 %v334_v43, %v333_v42  ;;  %v641_v47 = vpack.c.bf16 %v336_v46, %v335_v45  ;;  %v337_v48 = vld [vmem:[%s887_s2 + $0x70] sm:$0xff]  ;;  %v338_v49 = vld [vmem:[%s887_s2 + $0x78] sm:$0xff]  ;;  %v491_v51 = vld [vmem:[%s888_s3] ss:$0 sm:$0xff]  ;;  %s223_s25 = scalar_lea.vmem %s889_s4, %s489_s27 }
  0x11   : > { %606 = vmatpush3.bf16.msra.mxu0 %v605_v15  ;;  %v224_v41 = vld [vmem:[%s216_s30] sm:$0x3]  ;;  %v644_v50 = vpack.c.bf16 %v338_v49, %v337_v48 }
  0x12   : > { %607 = vmatprep.subr.bf16.mxu0 %v698_v3 }
  0x13   : > { %630 = vmatpush3.bf16.msra.mxu1 %v629_v24 }
  0x14   : > { %631 = vmatprep.subr.bf16.mxu1 %v698_v3 }
  0x15   : > { %609 = vmatpush3.bf16.msra.mxu0 %v608_v21 }
  0x16   : > { %610 = vmatprep.subr.bf16.mxu0 %v698_v3 }
  0x17   : > { %633 = vmatpush3.bf16.msra.mxu1 %v632_v30 }
  0x18   : > { %634 = vmatprep.subr.bf16.mxu1 %v698_v3 }
  0x19   : > { %612 = vmatpush3.bf16.msra.mxu0 %v611_v27 }
  0x1a   : > { %613 = vmatprep.subr.bf16.mxu0 %v698_v3 }
  0x1b   : > { %636 = vmatpush3.bf16.msra.mxu1 %v635_v36 }
  0x1c   : > { %637 = vmatprep.subr.bf16.mxu1 %v698_v3 }
  0x1d   : > { %615 = vmatpush3.bf16.msra.mxu0 %v614_v33 }
  0x1e   : > { %616 = vmatprep.subr.bf16.mxu0 %v698_v3 }
  0x1f   : > { %639 = vmatpush3.bf16.msra.mxu1 %v638_v44 }
  0x20   : > { %640 = vmatprep.subr.bf16.mxu1 %v698_v3 }
  0x21   : > { %618 = vmatpush3.bf16.msra.mxu0 %v617_v37 }
  0x22   : > { %619 = vmatprep.subr.bf16.mxu0 %v698_v3 }
  0x23   : > { %642 = vmatpush3.bf16.msra.mxu1 %v641_v47 }
  0x24   : > { %643 = vmatprep.subr.bf16.mxu1 %v698_v3 }
  0x25   : > { %621 = vmatpush3.bf16.msra.mxu0 %v620_v40 }
  0x27   : > { %645 = vmatpush3.bf16.msra.mxu1 %v644_v50 }
  0x28   : > { %561 = vmatmul.mubr.f32.vlgmr.msra.gmra.mrb[0].mxu0 %v224_v41 }
  0xfb   : > { %v314_v52 = vpop.f32.mrb[0].mxu0 }
  0xfc   : > { %v315_v53 = vadd.f32 %v491_v51, %v314_v52  ;;  %v562_v54 = vpop.f32.mrb[1].mxu0 }
  0xfe   : > { %v646_v55 = vround.rtne.f32 %v315_v53 }
 0x100   : > { %v319_v56 = vsub.f32 %v315_v53, %v646_v55 }
 0x102   : > { %v320_v57 = vmul.f32 %v319_v56, %v319_v56 }
 0x104   : > { %v321_v58 = vmul.f32 %v320_v57, %v319_v56 }
 0x106   : > { %v322_v59 = vadd.f32 %v646_v55, %v321_v58 }
 0x108   : > { %596 = vmatmul.mubr.f32.vlgmr.msra.gmra.mrb[0].mxu1 %v322_v59 }
 0x1db   : > { %v405_v60 = vpop.f32.mrb[0].mxu1 }
 0x1dc   : > { %v406_v61 = vadd.f32 128.0, %v405_v60  ;;  %v597_v62 = vpop.f32.mrb[1].mxu1 }
 0x1de   : > { %409 = vst [vmem:[%s223_s25] sm:$0x3] %v406_v61 }
 0x1df PF: > { %s14_s17 = sadd.s32 1, %s696_s17   ;;  %s890_s15 = smov %s692_s16 }
 0x1e0   : > { %p11_p5 = scmp.ge.s32.totalorder %s14_s17, 6   ;;  %s891_s16 = smov %s893_s18 }
 0x1e2   :  { %13 = sbr.rel (!%p11_p5) target bundleno = 2 (0x2), region = 66 }

// kernel: _diff_jpeg_impl.7
= control target key start
LH: loop header
LB: loop body
LE: loop exit
PB: predicated region body
PF: predicated region fallthrough
CT: control target
= control target key end

     0   :  { %7 = vsyncpa [#allocation4], 0  ;;  %s843_s0 = inlined_call_operand.vmem [shape: f32[2,32,32], index: 0, kind: input, shape index: {}]   ;;  %s844_s1 = inlined_call_operand.vmem [shape: f32[2,2,32,32], index: 1, kind: input, shape index: {}]   ;;  %s845_s2 = inlined_call_operand.hbm [shape: f32[2,3,32,32], index: 2, kind: output, shape index: {}]  }
   0x1   :  { %9 = vsyncpa [#allocation4 + $0x1], 0  ;;  %s675_s9 = smov 0   ;;  %s677_s10 = smov 0  }
   0x2   :  { %s679_s11 = smov 0   ;;  %s681_s12 = smov 0  }
   0x3   :  { %s683_s13 = smov 0   ;;  %s685_s14 = smov 0  }
   0x4 LB: > { %s482_s15 = sadd.s32 4294967295, %s655_s14   ;;  %s483_s16 = sadd.s32 4294967294, %s655_s14   ;;  %s655_s14 = sphi %s685_s14, %s15_s14   ;;  %s651_s13 = sphi %s683_s13, %s852_s13   ;;  %s647_s12 = sphi %s681_s12, %s851_s12   ;;  %s643_s11 = sphi %s679_s11, %s850_s11   ;;  %s639_s10 = sphi %s677_s10, %s849_s10   ;;  %s635_s9 = sphi %s675_s9, %s848_s9  }
   0x5   : > { %s27_s17 = sadd.s32 1, %s651_s13  ;;  %s64_s18 = sadd.s32 1, %s643_s11 }
   0x6   : > { %p29_p0 = scmp.ge.s32.totalorder %s27_s17, 2  ;;  %p71_p1 = scmp.ne.s32.totalorder %s643_s11, %s639_s10 }
   0x7   : > { %p72_p2 = scmp.eq.s32.totalorder %s655_s14, 0  ;;  %p103_p3 = scmp.eq.s32.totalorder %s482_s15, 1 }
   0x8   : > { %s854_s17 = smov (%p29_p0, %s27_s17), 0  ;;  %p108_p6 = scmp.ne.s32.totalorder %s639_s10, %s635_s9 }
   0x9   : > { %p73_p4 = por %p72_p2, %p71_p1  ;;  %p714_p5 = por %p103_p3, %p71_p1 }
   0xa   : > { %s59_s20 = ssub.s32 %s651_s13, %s854_s17  ;;  %p109_p8 = scmp.eq.s32.totalorder %s483_s16, 1 }
   0xb   : > { %p62_p7 = scmp.eq.s32.totalorder %s59_s20, 0  ;;  %p485_p10 = scmp.ge.s32.totalorder %s655_s14, 2 }
   0xc   : > { %p725_p9 = por %p109_p8, %p108_p6 }
   0xd   : > { %s723_s21 = scalar_select %p62_p7, %s643_s11, %s64_s18  }
   0xe   : > { %125 = sbr.rel (%p485_p10) target bundleno = 29 (0x1d), region = 16 }
  0x15   : > { %141 = sbr.rel (!%p73_p4) target bundleno = 29 (0x1d), region = 24  ;;  %s143_s23 = sand.u32 (%p73_p4), 1, %s643_s11  }
  0x16   : > { %s516_s24 = sshll.u32 (%p73_p4), %s651_s13, 5  ;;  %s486_s25 = sshll.u32 (%p73_p4), %s143_s23, 6 }
  0x17   : > { %s150_s28 = scalar_lea.vmem (%p73_p4), %s844_s1, %s516_s24  ;;  %s145_s29 = scalar_lea.vmem (%p73_p4), [#allocation2], %s486_s25 }
  0x18   : > { %v192_v0 = vld [vmem:[%s150_s28] sm:$0xff] (%p73_p4)  ;;  %v194_v1 = vld [vmem:[%s150_s28 + $0x8] sm:$0xff] (%p73_p4)  ;;  %v196_v2 = vld [vmem:[%s150_s28 + $0x10] sm:$0xff] (%p73_p4) }
  0x19   : > { %193 = vst [vmem:[%s145_s29] sm:$0xff] (%p73_p4), %v192_v0  ;;  %195 = vst [vmem:[%s145_s29 + $0x8] sm:$0xff] (%p73_p4), %v194_v1  ;;  %v198_v3 = vld [vmem:[%s150_s28 + $0x18] sm:$0xff] (%p73_p4)  ;;  %v200_v4 = vld [vmem:[%s150_s28 + $0x40] sm:$0xff] (%p73_p4) }
  0x1a   : > { %197 = vst [vmem:[%s145_s29 + $0x10] sm:$0xff] (%p73_p4), %v196_v2  ;;  %v202_v5 = vld [vmem:[%s150_s28 + $0x48] sm:$0xff] (%p73_p4)  ;;  %199 = vst [vmem:[%s145_s29 + $0x18] sm:$0xff] (%p73_p4), %v198_v3  ;;  %v204_v6 = vld [vmem:[%s150_s28 + $0x50] sm:$0xff] (%p73_p4) }
  0x1b   : > { %201 = vst [vmem:[%s145_s29 + $0x20] sm:$0xff] (%p73_p4), %v200_v4  ;;  %203 = vst [vmem:[%s145_s29 + $0x28] sm:$0xff] (%p73_p4), %v202_v5  ;;  %v206_v7 = vld [vmem:[%s150_s28 + $0x58] sm:$0xff] (%p73_p4) }
  0x1c   : > { %205 = vst [vmem:[%s145_s29 + $0x30] sm:$0xff] %v204_v6  ;;  %207 = vst [vmem:[%s145_s29 + $0x38] sm:$0xff] %v206_v7 }
  0x1d PF: > { %p489_p11 = scmp.ge.s32.totalorder %s655_s14, 1  ;;  %p212_p12 = scmp.lt.s32.totalorder %s655_s14, 3 }
  0x1f   : > { %p213_p13 = pnand %p489_p11, %p212_p12 }
  0x20   : > { %s740_s30 = sand.u32 (!%p213_p13), 1, %s639_s10   ;;  %p250_p0 = scmp.lt.s32.totalorder (!%p213_p13), %s647_s12, 1  ;;  %vm327_vm0 = vcmask (!%p213_p13), 261120  }
  0x21   : > { %216 = sbr.rel (%p213_p13) target bundleno = 77 (0x4d), region = 62  ;;  %s490_s3 = sshll.u32 (!%p213_p13), %s740_s30, 6 }
  0x22   : > { %s744_s4 = scalar_lea.vmem (!%p213_p13), [#allocation2], %s490_s3  ;;  %s518_s16 = smul.u32 (!%p213_p13), 96, %s740_s30 }
  0x23   : > { %v497_v8 = vld [vmem:[%s744_s4 + $0x20] sm:$0xff] (!%p213_p13)  ;;  %v498_v9 = vld [vmem:[%s744_s4 + $0x28] sm:$0xff] (!%p213_p13)  ;;  %v499_v10 = vld [vmem:[%s744_s4 + $0x30] sm:$0xff] (!%p213_p13)  ;;  %s519_s20 = smul.u32 (!%p213_p13), 1536, %s647_s12  ;;  %s367_s26 = scalar_lea.sflag (!%p213_p13), [#allocation4], %s740_s30 }
  0x24   : > { %v501_v11 = vadd.f32 (!%p213_p13), -128.0, %v497_v8  ;;  %v502_v12 = vadd.f32 (!%p213_p13), -128.0, %v498_v9  ;;  %v503_v13 = vadd.f32 (!%p213_p13), -128.0, %v499_v10  ;;  %v500_v14 = vld [vmem:[%s744_s4 + $0x38] sm:$0xff] (!%p213_p13)  ;;  %v265_v15 = vld [vmem:[%s744_s4] sm:$0xff] (!%p213_p13)  ;;  %v266_v18 = vld [vmem:[%s744_s4 + $0x8] sm:$0xff] (!%p213_p13) }
  0x25   : > { %v504_v16 = vadd.f32 (!%p213_p13), -128.0, %v500_v14  ;;  %v493_v17 = vadd.f32 (!%p213_p13), -128.0, %v265_v15  ;;  %v267_v19 = vld [vmem:[%s744_s4 + $0x10] sm:$0xff] (!%p213_p13)  ;;  %v494_v22 = vadd.f32 (!%p213_p13), -128.0, %v266_v18  ;;  %v268_v44 = vld [vmem:[%s744_s4 + $0x18] sm:$0xff] (!%p213_p13)  ;;  %s761_s18 = scalar_lea.vmem (!%p213_p13), [#allocation3], %s518_s16 }
  0x26   : > { %v282_v20 = vmul.f32 (!%p213_p13), 1.402, %v501_v11  ;;  %v283_v21 = vmul.f32 (!%p213_p13), 1.402, %v502_v12  ;;  %v284_v23 = vmul.f32 (!%p213_p13), 1.402, %v503_v13 }
  0x27   : > { %v285_v24 = vmul.f32 (!%p213_p13), 1.402, %v504_v16  ;;  %v290_v25 = vmul.f32 (!%p213_p13), 0.344136, %v493_v17  ;;  %v298_v29 = vmul.f32 (!%p213_p13), 0.714136, %v501_v11 }
  0x28   : > { %s251_s5 = scalar_select %p250_p0, %s647_s12, 1  ;;  %v495_v30 = vadd.f32 -128.0, %v267_v19  ;;  %v291_v37 = vmul.f32 0.344136, %v494_v22  ;;  %v299_v38 = vmul.f32 0.714136, %v502_v12 }
  0x29   : > { %v300_v48 = vmul.f32 0.714136, %v503_v13  ;;  %v496_v56 = vadd.f32 -128.0, %v268_v44  ;;  %v301_v1 = vmul.f32 0.714136, %v504_v16  ;;  %s382_s23 = sshll.u32 %s761_s18, 4  ;;  %s784_s12 = scalar_lea.hbm %s845_s2, %s519_s20  ;;  %s786_s23 = int_to_ptr.vmem [resolvable:$true] %s382_s23 }
  0x2a   : > { %s517_s6 = sshll.u32 %s251_s5, 5  ;;  %v292_v39 = vmul.f32 0.344136, %v495_v30  ;;  %v306_v2 = vmul.f32 1.772, %v493_v17  ;;  %s577_s27 = scalar_lea.vmem %s786_s23, 1536 }
  0x2b   : > { %s257_s15 = scalar_lea.vmem %s843_s0, %s517_s6  ;;  %v293_v0 = vmul.f32 0.344136, %v496_v56  ;;  %v307_v6 = vmul.f32 1.772, %v494_v22  ;;  %v308_v9 = vmul.f32 1.772, %v495_v30  ;;  %p578_p1 = scmp.ne.s32.totalorder %s786_s23, %s577_s27 }
  0x2c   : > { %v261_v26 = vld [vmem:[%s257_s15] sm:$0xff]  ;;  %v262_v27 = vld [vmem:[%s257_s15 + $0x8] sm:$0xff]  ;;  %v263_v28 = vld [vmem:[%s257_s15 + $0x10] sm:$0xff]  ;;  %v309_v10 = vmul.f32 1.772, %v496_v56  ;;  %s657_s28 = smov [#allocation3]  }
  0x2d   : > { %v286_v31 = vadd.f32 %v282_v20, %v261_v26  ;;  %v287_v32 = vadd.f32 %v283_v21, %v262_v27  ;;  %v288_v33 = vadd.f32 %v284_v23, %v263_v28  ;;  %v264_v34 = vld [vmem:[%s257_s15 + $0x18] sm:$0xff]  ;;  %v294_v35 = vsub.f32 %v261_v26, %v290_v25  ;;  %p579_p2 = pnand %p578_p1, %p714_p5  ;;  %s581_s29 = sshll.u32 %s657_s28, 4  ;;  %s582_s29 = int_to_ptr.vmem [resolvable:$false] %s581_s29 }
  0x2e   : > { %v289_v36 = vadd.f32 %v285_v24, %v264_v34  ;;  %v295_v46 = vsub.f32 %v262_v27, %v291_v37  ;;  %v296_v47 = vsub.f32 %v263_v28, %v292_v39  ;;  %v297_v7 = vsub.f32 %v264_v34, %v293_v0  ;;  %s583_s3 = scalar_lea.vmem %s582_s29, 3072  ;;  %p584_p4 = scmp.lt.s32.totalorder %s786_s23, %s582_s29 }
  0x2f   : > { %v314_v40 = vmax.f32 %v286_v31, 0.0  ;;  %v315_v41 = vmax.f32 %v287_v32, 0.0  ;;  %v316_v42 = vmax.f32 %v288_v33, 0.0  ;;  %v302_v43 = vsub.f32 %v294_v35, %v298_v29  ;;  %p580_p3 = pneg %p579_p2  ;;  %p585_p6 = scmp.lt.s32.totalorder %s583_s3, %s577_s27 }
  0x30   : > { %v317_v45 = vmax.f32 %v289_v36, 0.0  ;;  %v303_v54 = vsub.f32 %v295_v46, %v299_v38  ;;  %v304_v55 = vsub.f32 %v296_v47, %v300_v48  ;;  %v310_v8 = vadd.f32 %v306_v2, %v261_v26 }
  0x31   : > { %v318_v49 = vmin.f32 %v314_v40, 255.0  ;;  %v319_v50 = vmin.f32 %v315_v41, 255.0  ;;  %v320_v51 = vmin.f32 %v316_v42, 255.0  ;;  %v332_v52 = vmax.f32 %v302_v43, 0.0  ;;  %p586_p7 = por %p585_p6, %p584_p4 }
  0x32   : > { %v321_v53 = vmin.f32 %v317_v45, 255.0  ;;  %v333_v62 = vmax.f32 %v303_v54, 0.0  ;;  %v334_v63 = vmax.f32 %v304_v55, 0.0  ;;  %v311_v13 = vadd.f32 %v307_v6, %v262_v27 }
  0x33   : > { %v323_v57 = vmul.f32 0.003921569, %v318_v49  ;;  %v324_v58 = vmul.f32 0.003921569, %v319_v50  ;;  %v325_v59 = vmul.f32 0.003921569, %v320_v51  ;;  %v305_v14 = vsub.f32 %v297_v7, %v301_v1  ;;  %p587_p8 = pnand %p586_p7, %p580_p3 }
  0x34   : > { %v326_v60 = vmul.f32 0.003921569, %v321_v53  ;;  %v336_v61 = vmin.f32 %v332_v52, 255.0  ;;  %v337_v4 = vmin.f32 %v333_v62, 255.0  ;;  %v338_v5 = vmin.f32 %v334_v63, 255.0 }
  0x35   : > { %328 = vst.msk [vmem:[%s761_s18] sm:$0xff] %vm327_vm0, %v323_v57  ;;  %329 = vst.msk [vmem:[%s761_s18 + $0x8] sm:$0xff] %vm327_vm0, %v324_v58  ;;  %v349_v15 = vmax.f32 %v310_v8, 0.0  ;;  %v312_v16 = vadd.f32 %v308_v9, %v263_v28  ;;  %v313_v17 = vadd.f32 %v309_v10, %v264_v34  ;;  %v350_v18 = vmax.f32 %v311_v13, 0.0 }
  0x36   : > { %330 = vst.msk [vmem:[%s761_s18 + $0x10] sm:$0xff] %vm327_vm0, %v325_v59  ;;  %331 = vst.msk [vmem:[%s761_s18 + $0x18] sm:$0xff] %vm327_vm0, %v326_v60  ;;  %v340_v3 = vmul.f32 0.003921569, %v336_v61  ;;  %v341_v11 = vmul.f32 0.003921569, %v337_v4 }
  0x37   : > { %v342_v12 = vmul.f32 0.003921569, %v338_v5  ;;  %v335_v19 = vmax.f32 %v305_v14, 0.0  ;;  %v353_v20 = vmin.f32 %v349_v15, 255.0  ;;  %v351_v21 = vmax.f32 %v312_v16, 0.0 }
  0x38   : > { %505 = vst.msk [vmem:[%s761_s18 + $0x20] sm:$0xff] %vm327_vm0, %v340_v3  ;;  %506 = vst.msk [vmem:[%s761_s18 + $0x28] sm:$0xff] %vm327_vm0, %v341_v11  ;;  %v352_v22 = vmax.f32 %v313_v17, 0.0  ;;  %v354_v23 = vmin.f32 %v350_v18, 255.0 }
  0x39   : > { %507 = vst.msk [vmem:[%s761_s18 + $0x30] sm:$0xff] %vm327_vm0, %v342_v12  ;;  %v339_v24 = vmin.f32 %v335_v19, 255.0  ;;  %v357_v25 = vmul.f32 0.003921569, %v353_v20  ;;  %v355_v26 = vmin.f32 %v351_v21, 255.0 }
  0x3a   : > { %v356_v27 = vmin.f32 %v352_v22, 255.0  ;;  %v358_v28 = vmul.f32 0.003921569, %v354_v23 }
  0x3b   : > { %v343_v29 = vmul.f32 0.003921569, %v339_v24  ;;  %509 = vst.msk [vmem:[%s761_s18 + $0x40] sm:$0xff] %vm327_vm0, %v357_v25  ;;  %v359_v30 = vmul.f32 0.003921569, %v355_v26 }
  0x3c   : > { %v360_v31 = vmul.f32 0.003921569, %v356_v27  ;;  %510 = vst.msk [vmem:[%s761_s18 + $0x48] sm:$0xff] %vm327_vm0, %v358_v28 }
  0x3d   : > { %508 = vst.msk [vmem:[%s761_s18 + $0x38] sm:$0xff] %vm327_vm0, %v343_v29  ;;  %511 = vst.msk [vmem:[%s761_s18 + $0x50] sm:$0xff] %vm327_vm0, %v359_v30 }
  0x3e   : > { %512 = vst.msk [vmem:[%s761_s18 + $0x58] sm:$0xff] %vm327_vm0, %v360_v31 }
  0x3f   : > { %590 = shalt.err (!%p587_p8)
}
  0x40   : > { %s591_s4 = scalar_lea.hbm %s784_s12, 1536  ;;  %s595_s7 = scalar_lea.hbm %s845_s2, 3072 }
  0x41   : > { %p592_p11 = scmp.ne.s32.totalorder %s784_s12, %s591_s4  ;;  %p596_p0 = scmp.lt.u32.totalorder %s784_s12, %s845_s2 }
  0x42   : > { %p597_p1 = scmp.lt.u32.totalorder %s595_s7, %s591_s4  ;;  %p599_p3 = scmp.lt.u32.totalorder %s591_s4, %s784_s12 }
  0x43   : > { %p593_p12 = pnand %p592_p11, %p714_p5 }
  0x44   : > { %p598_p2 = por %p597_p1, %p596_p0 }
  0x45   : > { %p594_p13 = pneg %p593_p12 }
  0x46   : > { %p600_p4 = por %p599_p3, %p598_p2 }
  0x48   : > { %p601_p6 = pnand %p600_p4, %p594_p13 }
  0x4a   : > { %604 = shalt.err (!%p601_p6)
}
  0x4b   : > { %s658_s16 = smov 128   ;;  %s659_s18 = smov 8  }
  0x4c   : > { %520 = dma.vmem_to_hbm [thread:$0]  (%p714_p5), %s786_s23, 1536, %s784_s12, %s367_s26, %s658_s16, %s658_s16, %s659_s18  }
  0x4d PF: > { %s397_s20 = sand.u32 1, %s635_s9   ;;  %p523_p7 = pnand %p485_p10, %p725_p9 }
  0x4e   : > { %s398_s24 = scalar_lea.sflag [#allocation4], %s397_s20 }
  0x4f   : > { %630 = dma.done.wait (!%p523_p7), %s398_s24, 1536  }
  0x50   : > { %632 = vsyncadd (!%p523_p7), %s398_s24, 4294965760  ;;  %s15_s14 = sadd.s32 1, %s655_s14   ;;  %s848_s9 = smov %s639_s10 }
  0x51   : > { %p12_p8 = scmp.ge.s32.totalorder %s15_s14, 4   ;;  %s849_s10 = smov %s643_s11 }
  0x52   : > { %s850_s11 = smov %s723_s21  ;;  %s851_s12 = smov %s651_s13 }
  0x53   : > { %s852_s13 = smov %s854_s17  ;;  %14 = sbr.rel (!%p12_p8) target bundleno = 4 (0x4), region = 112 }
  0x5a   :  { %403 = vsyncpa [#allocation4], 1 }
  0x5b   :  { %405 = vsyncpa [#allocation4 + $0x1], 1 }

</bundles_post_ra>
